<compile_context>
chip_gen: v7x
topology: tpu7x:2x2x1
jax: 0.10.0
libtpu: 0.0.40
codegen_flags: <defaults>
</compile_context>

<pallas_src>
import jax
import jax.numpy as jnp
from jax.experimental import pallas as pl
from jax.experimental.pallas import tpu as pltpu

EPS = 1e-5
LANE = 128


# --------------------------------------------------------------------------- #
# Small helpers
# --------------------------------------------------------------------------- #
def _round_up(x, m):
    return ((x + m - 1) // m) * m


def _cdiv(a, b):
    return -(-a // b)


def _pad_axis(a, axis, new_size):
    pad = new_size - a.shape[axis]
    if pad == 0:
        return a
    widths = [(0, 0)] * a.ndim
    widths[axis] = (0, pad)
    return jnp.pad(a, widths)


def fold_bn(gamma, beta, mean, var, eps=EPS):
    scale = gamma / jnp.sqrt(var + eps)
    bias = beta - mean * scale
    return scale, bias                       # 1-D (C,)


def _vmem_capacity_bytes():
    """Per-core VMEM capacity (128 MiB on v5e/v6e, 64 MiB on v7x)."""
    try:
        info = pltpu.get_tpu_info()
        cap = getattr(info, "vmem_capacity_bytes", None)
        if cap:
            return int(cap)
    except Exception:
        pass
    return 64 * 1024 * 1024                  # conservative fallback (v7x)


def _tile_vmem_bytes(th, w, cio_p, cm_p):
    """Rough per-grid-step VMEM footprint for tile height `th`."""
    act = 2 * 2 * th * w * cio_p * 2                               # x/out, dbl-buf, bf16
    halo = 2 * 2 * 2 * w * cio_p * 2                               # halo rows
    wts = 2 * (cio_p * cm_p + 9 * cm_p * cm_p + cm_p * cio_p) * 2  # bf16 weights, dbl-buf
    bias = 2 * 2 * (2 * cm_p + cio_p) * 4
    inter = ((th + 2) * w * cm_p * (4 + 2)                         # h1 f32 + bf16
             + (th + 2) * (w + 2) * cm_p * 2                       # W-padded h1
             + th * w * 3 * cm_p * 2                               # per-ky patch
             + th * w * cm_p * 4                                   # conv2 accumulator
             + th * w * cio_p * 4 * 2)                             # h3 / residual
    return act + halo + wts + bias + inter


def _choose_tile_h(n, h, w, cio_p, cm_p):
    """Largest H tile that fits the VMEM budget, keeping >=4 grid blocks."""
    if h <= 8:
        return h
    budget = int(0.5 * _vmem_capacity_bytes())
    th = min(_round_up(h, 8), 256)
    while th > 8 and _tile_vmem_bytes(th, w, cio_p, cm_p) > budget:
        th -= 8
    # Keep enough blocks so both v7x TensorCores get work under "parallel" dims.
    while th > 8 and n * _cdiv(h, th) < 4:
        th = max(8, ((th // 2) + 7) // 8 * 8)
    return th


# --------------------------------------------------------------------------- #
# Fused Bottleneck forward (NHWC)
# --------------------------------------------------------------------------- #
def bottleneck_forward_nhwc(x, params, *, tile_h=None):
    """x: (N, H, W, Cin) NHWC (any float dtype). Returns (N, H, W, Cout) bf16."""
    N, H, W, Cin = x.shape
    w1, w2, w3 = params["w1"], params["w2"], params["w3"]
    Cmid = w1.shape[1]
    Cout = w3.shape[1]
    # Identity skip only (downsample=None, stride=1) -> shapes must match.
    assert Cin == Cout, "identity skip requires in_channels == out_channels*4"
    # TODO(synk): stride != 1 and the optional downsample branch are not implemented.

    f32, bf16 = jnp.float32, jnp.bfloat16
    Cio_p = _round_up(Cin, LANE)             # lane-dense in/out channels
    Cm_p = _round_up(Cmid, LANE)             # lane-dense mid channels

    TH = int(tile_h) if tile_h is not None else _choose_tile_h(N, H, W, Cio_p, Cm_p)
    TH = min(TH, H)
    H_pad = _round_up(H, TH)
    nH = H_pad // TH
    pad_h = H_pad - H                        # static; extra bottom rows are masked

    # ---- activations: bf16 in HBM (halves bandwidth on an HBM-bound layer) --
    xp = _pad_axis(x.astype(bf16), 3, Cio_p)
    if pad_h:
        xp = _pad_axis(xp, 1, H_pad)

    # ---- BN scale folded into weights; only bias+relu stays in the kernel ----
    w1p = _pad_axis(_pad_axis(w1 * params["s1"][None, :], 0, Cio_p), 1, Cm_p).astype(bf16)
    w2f = w2 * params["s2"][None, None, None, :]
    w2p = _pad_axis(_pad_axis(w2f, 2, Cm_p), 3, Cm_p)
    w2p = w2p.reshape(3, 3 * Cm_p, Cm_p).astype(bf16)       # per-ky (kx,cin) flatten
    w3p = _pad_axis(_pad_axis(w3 * params["s3"][None, :], 0, Cm_p), 1, Cio_p).astype(bf16)
    b1p = _pad_axis(params["b1"].astype(f32), 0, Cm_p)[None, :]
    b2p = _pad_axis(params["b2"].astype(f32), 0, Cm_p)[None, :]
    b3p = _pad_axis(params["b3"].astype(f32), 0, Cio_p)[None, :]

    # ---- one halo row above/below each H tile (contents masked at borders) ---
    # TODO(synk): replace this gather with an overlapping-window read
    # (pl.Element offsets or manual make_async_copy) to drop the extra HBM pass.
    zero_row = jnp.zeros((N, 1, W, Cio_p), bf16)
    if nH > 1:
        tops = xp[:, TH - 1:H_pad - 1:TH]    # rows t*TH - 1, t = 1..nH-1
        bots = xp[:, TH:H_pad:TH]            # rows (t+1)*TH, t = 0..nH-2
        halo_top = jnp.concatenate([zero_row, tops], axis=1)
        halo_bot = jnp.concatenate([bots, zero_row], axis=1)
    else:
        halo_top = zero_row
        halo_bot = zero_row

    # ----------------------------------------------------------------------- #
    # Kernel: one (batch image, TH output rows) tile of the fused Bottleneck.
    # ----------------------------------------------------------------------- #
    def kernel(x_ref, xt_ref, xb_ref,
               w1_ref, b1_ref, w2_ref, b2_ref, w3_ref, b3_ref,
               out_ref):
        th = pl.program_id(1)
        n_th = pl.num_programs(1)
        _, THk, Wk, Cio = x_ref.shape
        Cm = w1_ref.shape[1]

        x_main = x_ref[0].reshape(THk * Wk, Cio)             # bf16

        # ---- conv1 (1x1, BN scale pre-folded) + bias + relu ------------------
        def conv1(v2d):
            y = jnp.dot(v2d, w1_ref[...], preferred_element_type=f32)
            return jnp.maximum(y + b1_ref[...], 0.0)

        h1_main = conv1(x_main)                              # (TH*W, Cm) f32
        h1_top = conv1(xt_ref[0].reshape(Wk, Cio))           # (W, Cm)
        h1_bot = conv1(xb_ref[0].reshape(Wk, Cio))           # (W, Cm)

        # conv2's zero padding lives in h1-space: rows outside the true image
        # must be exactly zero (not relu(conv1(0)+b1)). Scalar-predicated
        # selects on the tiny halo rows; full-row mask only if H was padded.
        h1_top = jnp.where(th > 0, h1_top, 0.0)
        h1_bot = jnp.where(th < n_th - 1, h1_bot, 0.0)
        if pad_h:
            r = jax.lax.broadcasted_iota(jnp.int32, (THk * Wk, 1), 0)
            h1_main = jnp.where(r < (H - th * THk) * Wk, h1_main, 0.0)

        # Single bf16 cast of h1, then a W-padded copy so every conv2 tap is a
        # plain static slice (no pltpu.roll / edge masks needed).
        h1 = jnp.concatenate([h1_top, h1_main, h1_bot], axis=0)
        h1 = h1.astype(bf16).reshape(THk + 2, Wk, Cm)
        zcol = jnp.zeros((THk + 2, 1, Cm), bf16)
        h1p = jnp.concatenate([zcol, h1, zcol], axis=1)       # (TH+2, W+2, Cm)

        # ---- conv2 (3x3, stride 1, pad 1): 3 accumulated matmuls (K=3*Cm) ----
        h2 = None
        for ky in range(3):
            rows = h1p[ky:ky + THk]                           # (TH, W+2, Cm)
            patch = jnp.concatenate(
                [rows[:, 0:Wk], rows[:, 1:Wk + 1], rows[:, 2:Wk + 2]],
                axis=-1).reshape(THk * Wk, 3 * Cm)
            part = jnp.dot(patch, w2_ref[ky], preferred_element_type=f32)
            h2 = part if h2 is None else h2 + part
        h2 = jnp.maximum(h2 + b2_ref[...], 0.0)

        # ---- conv3 (1x1) + bias ----------------------------------------------
        h3 = jnp.dot(h2.astype(bf16), w3_ref[...], preferred_element_type=f32)
        h3 = h3 + b3_ref[...]

        # ---- identity skip + relu (f32), stored as bf16 ------------------------
        out = jnp.maximum(h3 + x_main.astype(f32), 0.0)
        out_ref[0] = out.reshape(THk, Wk, Cio).astype(out_ref.dtype)

    # ----------------------------------------------------------------------- #
    tile_idx = lambda n, t: (n, t, 0, 0)
    mat_idx = lambda n, t: (0, 0)
    w2_idx = lambda n, t: (0, 0, 0)

    in_specs = [
        pl.BlockSpec((1, TH, W, Cio_p), tile_idx),    # x tile
        pl.BlockSpec((1, 1, W, Cio_p), tile_idx),     # halo row above
        pl.BlockSpec((1, 1, W, Cio_p), tile_idx),     # halo row below
        pl.BlockSpec((Cio_p, Cm_p), mat_idx),         # w1 (scale folded)
        pl.BlockSpec((1, Cm_p), mat_idx),             # b1
        pl.BlockSpec((3, 3 * Cm_p, Cm_p), w2_idx),    # w2 (per-ky im2col)
        pl.BlockSpec((1, Cm_p), mat_idx),             # b2
        pl.BlockSpec((Cm_p, Cio_p), mat_idx),         # w3
        pl.BlockSpec((1, Cio_p), mat_idx),            # b3
    ]
    out_spec = pl.BlockSpec((1, TH, W, Cio_p), tile_idx)
    # TODO(synk): single-buffer the grid-invariant weight/bias operands
    # (pipeline_mode=pl.Buffered(1)) once that path is verified on v7x.

    est = _tile_vmem_bytes(TH, W, Cio_p, Cm_p)
    cap = _vmem_capacity_bytes()
    vmem_limit = int(min(0.9 * cap, 100 * 1024 * 1024,
                         max(32 * 1024 * 1024, 2 * est)))

    flops = 2 * N * H_pad * W * (Cio_p * Cm_p + 9 * Cm_p * Cm_p + Cm_p * Cio_p)
    bytes_accessed = (2 * N * H_pad * W * Cio_p * 2              # x in + out (bf16)
                      + 2 * N * nH * 2 * W * Cio_p * 2           # halo rows (read+gather)
                      + (Cio_p * Cm_p + 9 * Cm_p * Cm_p + Cm_p * Cio_p) * 2
                      + (2 * Cm_p + Cio_p) * 4)

    out_padded = pl.pallas_call(
        kernel,
        out_shape=jax.ShapeDtypeStruct((N, H_pad, W, Cio_p), bf16),
        grid_spec=pltpu.PrefetchScalarGridSpec(
            num_scalar_prefetch=0,
            grid=(N, nH),
            in_specs=in_specs,
            out_specs=out_spec,
        ),
        compiler_params=pltpu.CompilerParams(
            dimension_semantics=("parallel", "parallel"),
            vmem_limit_bytes=vmem_limit,
        ),
        cost_estimate=pl.CostEstimate(flops=flops, transcendentals=0,
                                      bytes_accessed=bytes_accessed),
    )(xp, halo_top, halo_bot, w1p, b1p, w2p, b2p, w3p, b3p)

    return out_padded[:, :H, :, :Cout]


def bottleneck_forward(x_nchw, params, **kw):
    """NCHW adapter around the NHWC kernel (PyTorch layout parity).
    TODO(synk): keep the surrounding model NHWC with 128-padded channels so the
    transpose / channel-pad HBM passes here disappear."""
    x = jnp.transpose(x_nchw, (0, 2, 3, 1))
    out = bottleneck_forward_nhwc(x, params, **kw)
    return jnp.transpose(out, (0, 3, 1, 2)).astype(jnp.float32)


# --------------------------------------------------------------------------- #
# Pure-JAX reference (same bf16-activation / bf16-weight / f32-epilogue
# numerics as the kernel)
# --------------------------------------------------------------------------- #
def reference_forward(x_nchw, params):
    f32, bf16 = jnp.float32, jnp.bfloat16
    x = jnp.transpose(x_nchw, (0, 2, 3, 1)).astype(bf16)    # bf16 activations
    xf = x.astype(f32)
    N, H, W, _ = x.shape
    w1 = (params["w1"] * params["s1"][None, :]).astype(bf16)
    w2 = (params["w2"] * params["s2"][None, None, None, :]).astype(bf16)
    w3 = (params["w3"] * params["s3"][None, :]).astype(bf16)

    h1 = jnp.einsum("nhwc,cd->nhwd", x, w1, preferred_element_type=f32)
    h1 = jnp.maximum(h1 + params["b1"], 0.0)

    h1p = jnp.pad(h1.astype(bf16), ((0, 0), (1, 1), (1, 1), (0, 0)))
    acc = jnp.zeros(h1.shape, f32)
    for ky in range(3):
        for kx in range(3):
            acc = acc + jnp.einsum("nhwc,cd->nhwd",
                                   h1p[:, ky:ky + H, kx:kx + W, :],
                                   w2[ky, kx], preferred_element_type=f32)
    h2 = jnp.maximum(acc + params["b2"], 0.0)

    h3 = jnp.einsum("nhwc,cd->nhwd", h2.astype(bf16), w3,
                    preferred_element_type=f32)
    h3 = h3 + params["b3"]

    out = jnp.maximum(h3 + xf, 0.0)
    return jnp.transpose(out, (0, 3, 1, 2))


# --------------------------------------------------------------------------- #
if __name__ == "__main__":
    # Bottleneck(in_channels=16, out_channels=4): expansion 4 -> output C = 16,
    # identity skip applies (downsample=None, stride=1). H=16 gives multiple H
    # tiles, exercising the cross-tile halo path.
    N, Cmid, H, W = 2, 4, 16, 16
    Cin = Cout = Cmid * 4

    key = jax.random.PRNGKey(0)
    ks = jax.random.split(key, 8)

    # Conv weights stored as (cin, cout) / (kh, kw, cin, cout) for NHWC matmuls
    # (a PyTorch (cout, cin, kh, kw) weight maps via transpose(2, 3, 1, 0)).
    w1 = 0.1 * jax.random.normal(ks[0], (Cin, Cmid), jnp.float32)
    w2 = 0.1 * jax.random.normal(ks[1], (3, 3, Cmid, Cmid), jnp.float32)
    w3 = 0.1 * jax.random.normal(ks[2], (Cmid, Cout), jnp.float32)

    def bn_params(k, c):
        k1, k2, k3, k4 = jax.random.split(k, 4)
        gamma = 1.0 + 0.1 * jax.random.normal(k1, (c,), jnp.float32)
        beta = 0.1 * jax.random.normal(k2, (c,), jnp.float32)
        mean = 0.1 * jax.random.normal(k3, (c,), jnp.float32)
        var = jnp.abs(jax.random.normal(k4, (c,), jnp.float32)) + 0.5
        return gamma, beta, mean, var

    s1, b1 = fold_bn(*bn_params(ks[3], Cmid))
    s2, b2 = fold_bn(*bn_params(ks[4], Cmid))
    s3, b3 = fold_bn(*bn_params(ks[5], Cout))

    params = dict(w1=w1, s1=s1, b1=b1,
                  w2=w2, s2=s2, b2=b2,
                  w3=w3, s3=s3, b3=b3)

    x = jax.random.normal(ks[6], (N, Cin, H, W), jnp.float32)

    out = jax.block_until_ready(bottleneck_forward(x, params))
    ref = jax.block_until_ready(reference_forward(x, params))

    assert out.shape == (N, Cout, H, W)
    max_err = float(jnp.max(jnp.abs(out - ref)))
    assert jnp.allclose(out, ref, atol=1e-2, rtol=1e-2), (
        f"mismatch vs reference, max abs err = {max_err}")

    print("KERNEL_OK")
</pallas_src>

<mosaic_0001>
module attributes {stable_mosaic.version = 11 : i64} {
  func.func @kernel(%arg0: i32, %arg1: i32, %arg2: memref<1x8x16x128xbf16, #tpu.memory_space<vmem>>, %arg3: memref<1x1x16x128xbf16, #tpu.memory_space<vmem>>, %arg4: memref<1x1x16x128xbf16, #tpu.memory_space<vmem>>, %arg5: memref<128x128xbf16, #tpu.memory_space<vmem>>, %arg6: memref<1x128xf32, #tpu.memory_space<vmem>>, %arg7: memref<3x384x128xbf16, #tpu.memory_space<vmem>>, %arg8: memref<1x128xf32, #tpu.memory_space<vmem>>, %arg9: memref<128x128xbf16, #tpu.memory_space<vmem>>, %arg10: memref<1x128xf32, #tpu.memory_space<vmem>>, %arg11: memref<1x8x16x128xbf16, #tpu.memory_space<vmem>>) attributes {dimension_semantics = [#tpu.dimension_semantics<parallel>, #tpu.dimension_semantics<parallel>], iteration_bounds = array<i64: 2, 2>, scalar_prefetch = 0 : i64, scratch_operands = 0 : i64, tpu.core_type = #tpu.core_type<tc>, window_params = [{transform_indices = @transform_0, window_bounds = array<i64: 1, 8, 16, 128>}, {transform_indices = @transform_1, window_bounds = array<i64: 1, 1, 16, 128>}, {transform_indices = @transform_2, window_bounds = array<i64: 1, 1, 16, 128>}, {pipeline_mode = #tpu.pipeline_mode<synchronous>, transform_indices = @transform_3, window_bounds = array<i64: 128, 128>}, {pipeline_mode = #tpu.pipeline_mode<synchronous>, transform_indices = @transform_4, window_bounds = array<i64: 1, 128>}, {pipeline_mode = #tpu.pipeline_mode<synchronous>, transform_indices = @transform_5, window_bounds = array<i64: 3, 384, 128>}, {pipeline_mode = #tpu.pipeline_mode<synchronous>, transform_indices = @transform_6, window_bounds = array<i64: 1, 128>}, {pipeline_mode = #tpu.pipeline_mode<synchronous>, transform_indices = @transform_7, window_bounds = array<i64: 128, 128>}, {pipeline_mode = #tpu.pipeline_mode<synchronous>, transform_indices = @transform_8, window_bounds = array<i64: 1, 128>}, {transform_indices = @transform_9, window_bounds = array<i64: 1, 8, 16, 128>}]} {
    %c0 = arith.constant 0 : index
    %c0_0 = arith.constant 0 : index
    %c0_1 = arith.constant 0 : index
    %c0_2 = arith.constant 0 : index
    %0 = vector.load %arg2[%c0, %c0_0, %c0_1, %c0_2] : memref<1x8x16x128xbf16, #tpu.memory_space<vmem>>, vector<1x8x16x128xbf16>
    %1 = vector.shape_cast %0 : vector<1x8x16x128xbf16> to vector<8x16x128xbf16>
    %2 = vector.shape_cast %1 : vector<8x16x128xbf16> to vector<128x128xbf16>
    %c0_3 = arith.constant 0 : index
    %c0_4 = arith.constant 0 : index
    %3 = vector.load %arg5[%c0_3, %c0_4] : memref<128x128xbf16, #tpu.memory_space<vmem>>, vector<128x128xbf16>
    %cst = arith.constant dense<0.000000e+00> : vector<128x128xf32>
    %4 = tpu.matmul %2, %3, %cst {dimension_numbers = #tpu.dot_dimension_numbers<[1], [0], [0], [1], [0, 0, 1, 1], [], []>} : vector<128x128xbf16>, vector<128x128xbf16>, vector<128x128xf32> -> vector<128x128xf32>
    %c0_5 = arith.constant 0 : index
    %c0_6 = arith.constant 0 : index
    %5 = vector.load %arg6[%c0_5, %c0_6] : memref<1x128xf32, #tpu.memory_space<vmem>>, vector<1x128xf32>
    %6 = vector.broadcast %5 : vector<1x128xf32> to vector<128x128xf32>
    %7 = arith.addf %4, %6 : vector<128x128xf32>
    %cst_7 = arith.constant 0.000000e+00 : f32
    %8 = vector.broadcast %cst_7 : f32 to vector<128x128xf32>
    %9 = arith.maximumf %7, %8 : vector<128x128xf32>
    %c0_8 = arith.constant 0 : index
    %c0_9 = arith.constant 0 : index
    %c0_10 = arith.constant 0 : index
    %c0_11 = arith.constant 0 : index
    %10 = vector.load %arg3[%c0_8, %c0_9, %c0_10, %c0_11] : memref<1x1x16x128xbf16, #tpu.memory_space<vmem>>, vector<1x1x16x128xbf16>
    %11 = vector.shape_cast %10 : vector<1x1x16x128xbf16> to vector<1x16x128xbf16>
    %12 = vector.shape_cast %11 : vector<1x16x128xbf16> to vector<16x128xbf16>
    %c0_12 = arith.constant 0 : index
    %c0_13 = arith.constant 0 : index
    %13 = vector.load %arg5[%c0_12, %c0_13] : memref<128x128xbf16, #tpu.memory_space<vmem>>, vector<128x128xbf16>
    %cst_14 = arith.constant dense<0.000000e+00> : vector<16x128xf32>
    %14 = tpu.matmul %12, %13, %cst_14 {dimension_numbers = #tpu.dot_dimension_numbers<[1], [0], [0], [1], [0, 0, 1, 1], [], []>} : vector<16x128xbf16>, vector<128x128xbf16>, vector<16x128xf32> -> vector<16x128xf32>
    %c0_15 = arith.constant 0 : index
    %c0_16 = arith.constant 0 : index
    %15 = vector.load %arg6[%c0_15, %c0_16] : memref<1x128xf32, #tpu.memory_space<vmem>>, vector<1x128xf32>
    %16 = vector.broadcast %15 : vector<1x128xf32> to vector<16x128xf32>
    %17 = arith.addf %14, %16 : vector<16x128xf32>
    %cst_17 = arith.constant 0.000000e+00 : f32
    %18 = vector.broadcast %cst_17 : f32 to vector<16x128xf32>
    %19 = arith.maximumf %17, %18 : vector<16x128xf32>
    %c0_18 = arith.constant 0 : index
    %c0_19 = arith.constant 0 : index
    %c0_20 = arith.constant 0 : index
    %c0_21 = arith.constant 0 : index
    %20 = vector.load %arg4[%c0_18, %c0_19, %c0_20, %c0_21] : memref<1x1x16x128xbf16, #tpu.memory_space<vmem>>, vector<1x1x16x128xbf16>
    %21 = vector.shape_cast %20 : vector<1x1x16x128xbf16> to vector<1x16x128xbf16>
    %22 = vector.shape_cast %21 : vector<1x16x128xbf16> to vector<16x128xbf16>
    %c0_22 = arith.constant 0 : index
    %c0_23 = arith.constant 0 : index
    %23 = vector.load %arg5[%c0_22, %c0_23] : memref<128x128xbf16, #tpu.memory_space<vmem>>, vector<128x128xbf16>
    %cst_24 = arith.constant dense<0.000000e+00> : vector<16x128xf32>
    %24 = tpu.matmul %22, %23, %cst_24 {dimension_numbers = #tpu.dot_dimension_numbers<[1], [0], [0], [1], [0, 0, 1, 1], [], []>} : vector<16x128xbf16>, vector<128x128xbf16>, vector<16x128xf32> -> vector<16x128xf32>
    %c0_25 = arith.constant 0 : index
    %c0_26 = arith.constant 0 : index
    %25 = vector.load %arg6[%c0_25, %c0_26] : memref<1x128xf32, #tpu.memory_space<vmem>>, vector<1x128xf32>
    %26 = vector.broadcast %25 : vector<1x128xf32> to vector<16x128xf32>
    %27 = arith.addf %24, %26 : vector<16x128xf32>
    %cst_27 = arith.constant 0.000000e+00 : f32
    %28 = vector.broadcast %cst_27 : f32 to vector<16x128xf32>
    %29 = arith.maximumf %27, %28 : vector<16x128xf32>
    %c0_i32 = arith.constant 0 : i32
    %30 = arith.cmpi sgt, %arg1, %c0_i32 : i32
    %cst_28 = arith.constant 0.000000e+00 : f32
    %31 = vector.broadcast %cst_28 : f32 to vector<16x128xf32>
    %32 = arith.select %30, %19, %31 : vector<16x128xf32>
    %c1_i32 = arith.constant 1 : i32
    %33 = arith.cmpi slt, %arg1, %c1_i32 : i32
    %cst_29 = arith.constant 0.000000e+00 : f32
    %34 = vector.broadcast %cst_29 : f32 to vector<16x128xf32>
    %35 = arith.select %33, %29, %34 : vector<16x128xf32>
    %36 = tpu.concatenate %32, %9, %35 in 0 : vector<16x128xf32>, vector<128x128xf32>, vector<16x128xf32> -> vector<160x128xf32>
    %37 = arith.truncf %36 : vector<160x128xf32> to vector<160x128xbf16>
    %38 = vector.shape_cast %37 : vector<160x128xbf16> to vector<10x16x128xbf16>
    %cst_30 = arith.constant 0.000000e+00 : bf16
    %39 = vector.broadcast %cst_30 : bf16 to vector<10x1x128xbf16>
    %40 = tpu.concatenate %39, %38, %39 in 1 : vector<10x1x128xbf16>, vector<10x16x128xbf16>, vector<10x1x128xbf16> -> vector<10x18x128xbf16>
    %41 = vector.extract_strided_slice %40 {offsets = [0, 0, 0], sizes = [8, 18, 128], strides = [1, 1, 1]} : vector<10x18x128xbf16> to vector<8x18x128xbf16>
    %42 = vector.extract_strided_slice %41 {offsets = [0, 0, 0], sizes = [8, 16, 128], strides = [1, 1, 1]} : vector<8x18x128xbf16> to vector<8x16x128xbf16>
    %43 = vector.extract_strided_slice %41 {offsets = [0, 1, 0], sizes = [8, 16, 128], strides = [1, 1, 1]} : vector<8x18x128xbf16> to vector<8x16x128xbf16>
    %44 = vector.extract_strided_slice %41 {offsets = [0, 2, 0], sizes = [8, 16, 128], strides = [1, 1, 1]} : vector<8x18x128xbf16> to vector<8x16x128xbf16>
    %45 = tpu.concatenate %42, %43, %44 in 2 : vector<8x16x128xbf16>, vector<8x16x128xbf16>, vector<8x16x128xbf16> -> vector<8x16x384xbf16>
    %46 = vector.shape_cast %45 : vector<8x16x384xbf16> to vector<128x384xbf16>
    %c0_31 = arith.constant 0 : index
    %c0_32 = arith.constant 0 : index
    %c0_33 = arith.constant 0 : index
    %47 = vector.load %arg7[%c0_31, %c0_32, %c0_33] : memref<3x384x128xbf16, #tpu.memory_space<vmem>>, vector<1x384x128xbf16>
    %48 = vector.shape_cast %47 : vector<1x384x128xbf16> to vector<384x128xbf16>
    %cst_34 = arith.constant dense<0.000000e+00> : vector<128x128xf32>
    %49 = tpu.matmul %46, %48, %cst_34 {dimension_numbers = #tpu.dot_dimension_numbers<[1], [0], [0], [1], [0, 0, 1, 1], [], []>} : vector<128x384xbf16>, vector<384x128xbf16>, vector<128x128xf32> -> vector<128x128xf32>
    %50 = vector.extract_strided_slice %40 {offsets = [1, 0, 0], sizes = [8, 18, 128], strides = [1, 1, 1]} : vector<10x18x128xbf16> to vector<8x18x128xbf16>
    %51 = vector.extract_strided_slice %50 {offsets = [0, 0, 0], sizes = [8, 16, 128], strides = [1, 1, 1]} : vector<8x18x128xbf16> to vector<8x16x128xbf16>
    %52 = vector.extract_strided_slice %50 {offsets = [0, 1, 0], sizes = [8, 16, 128], strides = [1, 1, 1]} : vector<8x18x128xbf16> to vector<8x16x128xbf16>
    %53 = vector.extract_strided_slice %50 {offsets = [0, 2, 0], sizes = [8, 16, 128], strides = [1, 1, 1]} : vector<8x18x128xbf16> to vector<8x16x128xbf16>
    %54 = tpu.concatenate %51, %52, %53 in 2 : vector<8x16x128xbf16>, vector<8x16x128xbf16>, vector<8x16x128xbf16> -> vector<8x16x384xbf16>
    %55 = vector.shape_cast %54 : vector<8x16x384xbf16> to vector<128x384xbf16>
    %c1 = arith.constant 1 : index
    %c0_35 = arith.constant 0 : index
    %c0_36 = arith.constant 0 : index
    %56 = vector.load %arg7[%c1, %c0_35, %c0_36] : memref<3x384x128xbf16, #tpu.memory_space<vmem>>, vector<1x384x128xbf16>
    %57 = vector.shape_cast %56 : vector<1x384x128xbf16> to vector<384x128xbf16>
    %cst_37 = arith.constant dense<0.000000e+00> : vector<128x128xf32>
    %58 = tpu.matmul %55, %57, %cst_37 {dimension_numbers = #tpu.dot_dimension_numbers<[1], [0], [0], [1], [0, 0, 1, 1], [], []>} : vector<128x384xbf16>, vector<384x128xbf16>, vector<128x128xf32> -> vector<128x128xf32>
    %59 = arith.addf %49, %58 : vector<128x128xf32>
    %60 = vector.extract_strided_slice %40 {offsets = [2, 0, 0], sizes = [8, 18, 128], strides = [1, 1, 1]} : vector<10x18x128xbf16> to vector<8x18x128xbf16>
    %61 = vector.extract_strided_slice %60 {offsets = [0, 0, 0], sizes = [8, 16, 128], strides = [1, 1, 1]} : vector<8x18x128xbf16> to vector<8x16x128xbf16>
    %62 = vector.extract_strided_slice %60 {offsets = [0, 1, 0], sizes = [8, 16, 128], strides = [1, 1, 1]} : vector<8x18x128xbf16> to vector<8x16x128xbf16>
    %63 = vector.extract_strided_slice %60 {offsets = [0, 2, 0], sizes = [8, 16, 128], strides = [1, 1, 1]} : vector<8x18x128xbf16> to vector<8x16x128xbf16>
    %64 = tpu.concatenate %61, %62, %63 in 2 : vector<8x16x128xbf16>, vector<8x16x128xbf16>, vector<8x16x128xbf16> -> vector<8x16x384xbf16>
    %65 = vector.shape_cast %64 : vector<8x16x384xbf16> to vector<128x384xbf16>
    %c2 = arith.constant 2 : index
    %c0_38 = arith.constant 0 : index
    %c0_39 = arith.constant 0 : index
    %66 = vector.load %arg7[%c2, %c0_38, %c0_39] : memref<3x384x128xbf16, #tpu.memory_space<vmem>>, vector<1x384x128xbf16>
    %67 = vector.shape_cast %66 : vector<1x384x128xbf16> to vector<384x128xbf16>
    %cst_40 = arith.constant dense<0.000000e+00> : vector<128x128xf32>
    %68 = tpu.matmul %65, %67, %cst_40 {dimension_numbers = #tpu.dot_dimension_numbers<[1], [0], [0], [1], [0, 0, 1, 1], [], []>} : vector<128x384xbf16>, vector<384x128xbf16>, vector<128x128xf32> -> vector<128x128xf32>
    %69 = arith.addf %59, %68 : vector<128x128xf32>
    %c0_41 = arith.constant 0 : index
    %c0_42 = arith.constant 0 : index
    %70 = vector.load %arg8[%c0_41, %c0_42] : memref<1x128xf32, #tpu.memory_space<vmem>>, vector<1x128xf32>
    %71 = vector.broadcast %70 : vector<1x128xf32> to vector<128x128xf32>
    %72 = arith.addf %69, %71 : vector<128x128xf32>
    %cst_43 = arith.constant 0.000000e+00 : f32
    %73 = vector.broadcast %cst_43 : f32 to vector<128x128xf32>
    %74 = arith.maximumf %72, %73 : vector<128x128xf32>
    %75 = arith.truncf %74 : vector<128x128xf32> to vector<128x128xbf16>
    %c0_44 = arith.constant 0 : index
    %c0_45 = arith.constant 0 : index
    %76 = vector.load %arg9[%c0_44, %c0_45] : memref<128x128xbf16, #tpu.memory_space<vmem>>, vector<128x128xbf16>
    %cst_46 = arith.constant dense<0.000000e+00> : vector<128x128xf32>
    %77 = tpu.matmul %75, %76, %cst_46 {dimension_numbers = #tpu.dot_dimension_numbers<[1], [0], [0], [1], [0, 0, 1, 1], [], []>} : vector<128x128xbf16>, vector<128x128xbf16>, vector<128x128xf32> -> vector<128x128xf32>
    %c0_47 = arith.constant 0 : index
    %c0_48 = arith.constant 0 : index
    %78 = vector.load %arg10[%c0_47, %c0_48] : memref<1x128xf32, #tpu.memory_space<vmem>>, vector<1x128xf32>
    %79 = vector.broadcast %78 : vector<1x128xf32> to vector<128x128xf32>
    %80 = arith.addf %77, %79 : vector<128x128xf32>
    %81 = arith.extf %2 : vector<128x128xbf16> to vector<128x128xf32>
    %82 = arith.addf %80, %81 : vector<128x128xf32>
    %cst_49 = arith.constant 0.000000e+00 : f32
    %83 = vector.broadcast %cst_49 : f32 to vector<128x128xf32>
    %84 = arith.maximumf %82, %83 : vector<128x128xf32>
    %85 = vector.shape_cast %84 : vector<128x128xf32> to vector<8x16x128xf32>
    %86 = arith.truncf %85 : vector<8x16x128xf32> to vector<8x16x128xbf16>
    %c0_50 = arith.constant 0 : index
    %c0_51 = arith.constant 0 : index
    %c0_52 = arith.constant 0 : index
    %c0_53 = arith.constant 0 : index
    %87 = vector.load %arg11[%c0_50, %c0_51, %c0_52, %c0_53] : memref<1x8x16x128xbf16, #tpu.memory_space<vmem>>, vector<1x8x16x128xbf16>
    %88 = vector.shape_cast %87 : vector<1x8x16x128xbf16> to vector<8x16x128xbf16>
    %89 = vector.shape_cast %86 : vector<8x16x128xbf16> to vector<1x8x16x128xbf16>
    tpu.vector_store %arg11[%c0_50, %c0_51, %c0_52, %c0_53], %89 {strides = array<i32>} : memref<1x8x16x128xbf16, #tpu.memory_space<vmem>>, vector<1x8x16x128xbf16>,
    return
  }
  func.func @transform_0(%arg0: i32, %arg1: i32) -> (i32, i32, i32, i32) {
    %c0_i32 = arith.constant 0 : i32
    %c0_i32_0 = arith.constant 0 : i32
    %c0_i32_1 = arith.constant 0 : i32
    return %arg0, %arg1, %c0_i32, %c0_i32_0 : i32, i32, i32, i32
  }
  func.func @transform_1(%arg0: i32, %arg1: i32) -> (i32, i32, i32, i32) {
    %c0_i32 = arith.constant 0 : i32
    %c0_i32_0 = arith.constant 0 : i32
    %c0_i32_1 = arith.constant 0 : i32
    return %arg0, %arg1, %c0_i32, %c0_i32_0 : i32, i32, i32, i32
  }
  func.func @transform_2(%arg0: i32, %arg1: i32) -> (i32, i32, i32, i32) {
    %c0_i32 = arith.constant 0 : i32
    %c0_i32_0 = arith.constant 0 : i32
    %c0_i32_1 = arith.constant 0 : i32
    return %arg0, %arg1, %c0_i32, %c0_i32_0 : i32, i32, i32, i32
  }
  func.func @transform_3(%arg0: i32, %arg1: i32) -> (i32, i32) {
    %c0_i32 = arith.constant 0 : i32
    %c0_i32_0 = arith.constant 0 : i32
    %c0_i32_1 = arith.constant 0 : i32
    return %c0_i32, %c0_i32_0 : i32, i32
  }
  func.func @transform_4(%arg0: i32, %arg1: i32) -> (i32, i32) {
    %c0_i32 = arith.constant 0 : i32
    %c0_i32_0 = arith.constant 0 : i32
    %c0_i32_1 = arith.constant 0 : i32
    return %c0_i32, %c0_i32_0 : i32, i32
  }
  func.func @transform_5(%arg0: i32, %arg1: i32) -> (i32, i32, i32) {
    %c0_i32 = arith.constant 0 : i32
    %c0_i32_0 = arith.constant 0 : i32
    %c0_i32_1 = arith.constant 0 : i32
    %c0_i32_2 = arith.constant 0 : i32
    return %c0_i32, %c0_i32_0, %c0_i32_1 : i32, i32, i32
  }
  func.func @transform_6(%arg0: i32, %arg1: i32) -> (i32, i32) {
    %c0_i32 = arith.constant 0 : i32
    %c0_i32_0 = arith.constant 0 : i32
    %c0_i32_1 = arith.constant 0 : i32
    return %c0_i32, %c0_i32_0 : i32, i32
  }
  func.func @transform_7(%arg0: i32, %arg1: i32) -> (i32, i32) {
    %c0_i32 = arith.constant 0 : i32
    %c0_i32_0 = arith.constant 0 : i32
    %c0_i32_1 = arith.constant 0 : i32
    return %c0_i32, %c0_i32_0 : i32, i32
  }
  func.func @transform_8(%arg0: i32, %arg1: i32) -> (i32, i32) {
    %c0_i32 = arith.constant 0 : i32
    %c0_i32_0 = arith.constant 0 : i32
    %c0_i32_1 = arith.constant 0 : i32
    return %c0_i32, %c0_i32_0 : i32, i32
  }
  func.func @transform_9(%arg0: i32, %arg1: i32) -> (i32, i32, i32, i32) {
    %c0_i32 = arith.constant 0 : i32
    %c0_i32_0 = arith.constant 0 : i32
    %c0_i32_1 = arith.constant 0 : i32
    return %arg0, %arg1, %c0_i32, %c0_i32_0 : i32, i32, i32, i32
  }
}

</mosaic_0001>

<bundles_post_ra>
// kernel: tpu_custom_call.1
= control target key start
LH: loop header
LB: loop body
LE: loop exit
PB: predicated region body
PF: predicated region fallthrough
CT: control target
= control target key end

     0   :  { %s5112_s0 = inlined_call_operand.hbm [shape: bf16[2,16,16,128], index: 0, kind: input, shape index: {}]   ;;  %s5113_s1 = inlined_call_operand.hbm [shape: bf16[2,2,16,128], index: 1, kind: input, shape index: {}]   ;;  %s5114_s2 = inlined_call_operand.hbm [shape: bf16[2,2,16,128], index: 2, kind: input, shape index: {}]   ;;  %s5115_s3 = inlined_call_operand.hbm [shape: bf16[128,128], index: 3, kind: input, shape index: {}]   ;;  %s5116_s4 = inlined_call_operand.vmem [shape: f32[1,128], index: 4, kind: input, shape index: {}]   ;;  %s5117_s5 = inlined_call_operand.hbm [shape: bf16[3,384,128], index: 5, kind: input, shape index: {}]   ;;  %s5118_s6 = inlined_call_operand.vmem [shape: f32[1,128], index: 6, kind: input, shape index: {}]   ;;  %s5119_s7 = inlined_call_operand.hbm [shape: bf16[128,128], index: 7, kind: input, shape index: {}]   ;;  %s5120_s8 = inlined_call_operand.vmem [shape: f32[1,128], index: 8, kind: input, shape index: {}]   ;;  %s5121_s9 = inlined_call_operand.hbm [shape: bf16[2,16,16,128], index: 9, kind: output, shape index: {}]  }
   0x1   :  { %5155 = sst [smem:[#allocation32_spill]] %s5113_s1 }
   0x2   :  { %5156 = sst [smem:[#allocation33_spill]] %s5115_s3 }
   0x3   :  { %5157 = sst [smem:[#allocation34_spill]] %s5116_s4 }
   0x4   :  { %5158 = sst [smem:[#allocation35_spill]] %s5118_s6 }
   0x5   :  { %5159 = sst [smem:[#allocation36_spill]] %s5120_s8 }
   0x6   :  { %5160 = sst [smem:[#allocation37_spill]] %s5121_s9 }
   0x7   :  { %14 = vsyncpa [#allocation3], 0 }
   0x8   :  { %16 = vsyncpa [#allocation3 + $0x1], 0 }
   0x9   :  { %17 = vsyncpa [#allocation6], 0 }
   0xa   :  { %19 = vsyncpa [#allocation6 + $0x1], 0 }
   0xb   :  { %20 = vsyncpa [#allocation9], 0 }
   0xc   :  { %21 = vsyncpa [#allocation12], 0 }
   0xd   :  { %22 = vsyncpa [#allocation4], 0 }
   0xe   :  { %24 = vsyncpa [#allocation4 + $0x1], 0  ;;  %s4258_s30 = smov 0   ;;  %s4260_s10 = smov 0  }
   0xf   :  { %s4262_s11 = smov 0   ;;  %s4264_s12 = smov 0  }
  0x10   :  { %s4266_s13 = smov 0   ;;  %s4268_s14 = smov 0  }
  0x11   :  { %s4270_s15 = smov 0   ;;  %s4272_s16 = smov 0  }
  0x12 LB: > { %5161 = sst [smem:[#allocation19_spill]] %s4165_s30  ;;  %s4299_s17 = sadd.s32 4294967295, %s4193_s16   ;;  %s4193_s16 = sphi %s4272_s16, %s30_s16   ;;  %s4189_s15 = sphi %s4270_s15, %s5227_s15   ;;  %s4185_s14 = sphi %s4268_s14, %s5226_s14   ;;  %s4181_s13 = sphi %s4266_s13, %s5225_s13   ;;  %s4177_s12 = sphi %s4264_s12, %s5224_s12   ;;  %s4173_s11 = sphi %s4262_s11, %s5221_s11   ;;  %s4169_s10 = sphi %s4260_s10, %s5220_s10   ;;  %s4165_s30 = sphi %s4258_s30, %s5219_s30  }
  0x13   : > { %5162 = sst [smem:[#allocation20_spill]] %s4169_s10  ;;  %s2884_s18 = sadd.s32 4294967294, %s4193_s16  }
  0x14   : > { %5163 = sst [smem:[#allocation21_spill]] %s4173_s11  ;;  %p58_p0 = scmp.ne.s32.totalorder %s4173_s11, %s4169_s10 }
  0x15   : > { %5164 = sst [smem:[#allocation22_spill]] %s4177_s12  ;;  %p59_p1 = scmp.eq.s32.totalorder %s4193_s16, 0 }
  0x16   : > { %5165 = sst [smem:[#allocation23_spill]] %s4181_s13  ;;  %p64_p2 = scmp.ne.s32.totalorder %s4169_s10, %s4165_s30 }
  0x17   : > { %5166 = sst [smem:[#allocation24_spill]] %s4193_s16  ;;  %p5127_p3 = scmp.eq.s32.totalorder %s4299_s17, 0 }
  0x18   : > { %5167 = sst [smem:[#allocation25_spill]] %s4299_s17  ;;  %p272_p4 = scmp.eq.s32.totalorder %s4299_s17, 3 }
  0x19   : > { %p4310_p5 = por %p59_p1, %p58_p0  ;;  %p278_p6 = scmp.eq.s32.totalorder %s2884_s18, 3 }
  0x1a   : > { %p4316_p7 = por %p5127_p3, %p64_p2  ;;  %p4320_p8 = por %p272_p4, %p58_p0 }
  0x1b   : > { %s5168_s20 = scalar_select %p4310_p5, 1, 0 }
  0x1c   : > { %s5169_s21 = scalar_select %p4316_p7, 1, 0 }
  0x1d   : > { %s5171_s22 = scalar_select %p4320_p8, 1, 0 }
  0x1e   : > { %5170 = sst [smem:[#allocation26_spill]] %s5169_s21  ;;  %p4324_p9 = por %p278_p6, %p64_p2 }
  0x1f   : > { %5172 = sst [smem:[#allocation27_spill]] %s5171_s22  ;;  %p2885_p10 = scmp.ge.s32.totalorder %s4193_s16, 1 }
  0x20   : > { %s5173_s23 = scalar_select %p4324_p9, 1, 0 }
  0x21   : > { %p285_p11 = scmp.lt.s32.totalorder %s4193_s16, 5  ;;  %s4195_s25 = smov [#allocation8]  }
  0x22   : > { %5174 = sst [smem:[#allocation28_spill]] %s5173_s23  ;;  %s297_s26 = sshll.u32 %s4195_s25, 4  ;;  %s298_s26 = int_to_ptr.vmem [resolvable:$true] %s297_s26 }
  0x23   : > { %p4330_p12 = pnand %p2885_p10, %p285_p11  ;;  %s42_s28 = sadd.s32 1, %s4189_s15 }
  0x24   : > { %s39_s29 = sadd.s32 1, %s4185_s14  ;;  %s5177_s3 = sld [smem:[#allocation33_spill]] }
  0x25   : > { %s5175_s24 = scalar_select %p4330_p12, 1, 0 }
  0x26   : > { %p3690_p13 = pneg %p4330_p12 }
  0x28   : > { %p4338_p0 = pnand %p3690_p13, %p5127_p3 }
  0x2a   : > { %s5176_s27 = scalar_select %p4338_p0, 1, 0 }
  0x2b   : > { %s3909_s23 = scalar_lea.hbm %s5177_s3, 1024  ;;  %p4352_p2 = pneg %p4338_p0 }
  0x2c   : > { %p3910_p1 = scmp.ne.s32.totalorder %s5177_s3, %s3909_s23  ;;  %p3916_p10 = scmp.lt.u32.totalorder %s3909_s23, %s5177_s3 }
  0x2d   : > { %s5178_s25 = scalar_select %p4352_p2, 1, 0 }
  0x2e   : > { %p3912_p4 = pnand %p4352_p2, %p3910_p1 }
  0x30   : > { %p3913_p6 = pneg %p3912_p4 }
  0x32   : > { %p3918_p11 = pnand %p3916_p10, %p3913_p6 }
  0x34   : > { %3921 = shalt.err (!%p3918_p11)
}
  0x35   : > { %s3922_s19 = scalar_lea.vmem %s298_s26, 1024  ;;  %p3930_p8 = scmp.lt.s32.totalorder %s298_s26, %s298_s26 }
  0x36   : > { %p3923_p13 = scmp.ne.s32.totalorder %s298_s26, %s3922_s19  ;;  %p3931_p7 = scmp.lt.s32.totalorder %s3922_s19, %s3922_s19 }
  0x38   : > { %p3925_p3 = pnand %p3923_p13, %p4352_p2  ;;  %p3932_p12 = por %p3931_p7, %p3930_p8 }
  0x3a   : > { %p3926_p9 = pneg %p3925_p3 }
  0x3c   : > { %p3933_p5 = pnand %p3932_p12, %p3926_p9 }
  0x3e   : > { %3936 = shalt.err (!%p3933_p5)
}
  0x3f   : > { %s5131_s9 = smov 64   ;;  %s5133_s30 = smov 4  }
  0x40   : > { %3693 = dma.hbm_to_vmem [thread:$0]  (!%p4338_p0), %s5177_s3, 1024, %s298_s26, [#allocation9], %s5131_s9, %s5131_s9, %s5133_s30  }
  0x41   : > { %p40_p3 = scmp.ge.s32.totalorder %s39_s29, 2  ;;  %p3717_p5 = scmp.lt.s32.totalorder %s4193_s16, 4 }
  0x42   : > { %s4373_s23 = sand.u32 1, %s4173_s11   ;;  %s370_s18 = sand.u32 1, %s4193_s16  }
  0x43   : > { %s5229_s29 = smov (%p40_p3, %s39_s29), 0  ;;  %s5231_s28 = smov (!%p40_p3, %s42_s28), %s4189_s15 }
  0x44   : > { %5179 = sst [smem:[#allocation29_spill]] %s5229_s29  ;;  %s47_s19 = ssub.s32 %s4185_s14, %s5229_s29 }
  0x45   : > { %p5180_p7 = scmp.ne.s32.totalorder %s5168_s20, 0  ;;  %p44_p9 = scmp.ge.s32.totalorder %s5231_s28, 2 }
  0x46   : > { %s5139_s26 = sshll.u32 %s4373_s23, 3  ;;  %s2896_s13 = sshll.u32 %s4185_s14, 1 }
  0x47   : > { %p4383_p8 = pnand %p3717_p5, %p5180_p7  ;;  %s5233_s28 = smov (%p44_p9, %s5231_s28), 0 }
  0x48   : > { %5182 = sst [smem:[#allocation30_spill]] %s5233_s28  ;;  %s46_s22 = ssub.s32 %s4189_s15, %s5233_s28 }
  0x49   : > { %s5181_s8 = scalar_select %p4383_p8, 1, 0 }
  0x4a   : > { %s2897_s9 = sshll.u32 %s4189_s15, 2  ;;  %s48_s30 = sor.u32 %s47_s19, %s46_s22 }
  0x4b   : > { %s4394_s3 = sadd.s32 %s2897_s9, %s2896_s13  ;;  %p49_p12 = scmp.eq.s32.totalorder %s48_s30, 0 }
  0x4c   : > { %s2898_s20 = sshll.u32 %s4394_s3, 6  ;;  %s5183_s1 = sld [smem:[#allocation32_spill]] }
  0x4d   : > { %s374_s28 = scalar_lea.vmem [#allocation5], %s5139_s26  ;;  %s5184_s19 = sadd.s32 1, %s4173_s11 }
  0x4e   : > { %s383_s4 = sshll.u32 %s374_s28, 4  ;;  %s4413_s30 = scalar_lea.sflag [#allocation6], %s370_s18  ;;  %s4411_s4 = int_to_ptr.vmem [resolvable:$true] %s383_s4 }
  0x4f   : > { %s4409_s9 = scalar_select %p49_p12, %s4173_s11, %s5184_s19  }
  0x50   : > { %p4419_p4 = pneg %p4383_p8 }
  0x51   : > { %5185 = sst [smem:[#allocation31_spill]] %s4409_s9 }
  0x52   : > { %s4402_s6 = scalar_lea.hbm %s5183_s1, %s2898_s20  ;;  %s3942_s22 = scalar_lea.hbm %s5183_s1, 512 }
  0x53   : > { %s3937_s13 = scalar_lea.hbm %s4402_s6, 128  ;;  %p3943_p11 = scmp.lt.u32.totalorder %s4402_s6, %s5183_s1 }
  0x54   : > { %p3938_p1 = scmp.ne.s32.totalorder %s4402_s6, %s3937_s13  ;;  %p3944_p13 = scmp.lt.u32.totalorder %s3942_s22, %s3937_s13 }
  0x55   : > { %s5186_s16 = scalar_select %p4419_p4, 1, 0 }
  0x56   : > { %p3940_p6 = pnand %p4419_p4, %p3938_p1  ;;  %p3945_p3 = por %p3944_p13, %p3943_p11 }
  0x57   : > { %p3946_p5 = scmp.lt.u32.totalorder %s3937_s13, %s4402_s6 }
  0x58   : > { %p3941_p10 = pneg %p3940_p6 }
  0x59   : > { %p3947_p7 = por %p3946_p5, %p3945_p3 }
  0x5b   : > { %p3948_p9 = pnand %p3947_p7, %p3941_p10 }
  0x5d   : > { %3951 = shalt.err (!%p3948_p9)
}
  0x5e   : > { %s3952_s18 = scalar_lea.vmem %s4411_s4, 128  ;;  %s4198_s29 = smov [#allocation5]  }
  0x5f   : > { %p3953_p12 = scmp.ne.s32.totalorder %s4411_s4, %s3952_s18  ;;  %s3957_s28 = sshll.u32 %s4198_s29, 4  ;;  %s3958_s28 = int_to_ptr.vmem [resolvable:$false] %s3957_s28 }
  0x60   : > { %s3959_s26 = scalar_lea.vmem %s3958_s28, 256  ;;  %p3960_p0 = scmp.lt.s32.totalorder %s4411_s4, %s3958_s28 }
  0x61   : > { %p3955_p1 = pnand %p3953_p12, %p4419_p4  ;;  %p3961_p2 = scmp.lt.s32.totalorder %s3959_s26, %s3952_s18 }
  0x63   : > { %p3956_p6 = pneg %p3955_p1  ;;  %p3962_p11 = por %p3961_p2, %p3960_p0 }
  0x65   : > { %p3963_p13 = pnand %p3962_p11, %p3956_p6 }
  0x67   : > { %3966 = shalt.err (!%p3963_p13)
}
  0x68   : > { %s5187_s13 = smov 4   ;;  %s5188_s22 = smov 64  }
  0x69   : > { %3706 = dma.hbm_to_vmem [thread:$0]  (!%p4383_p8), %s4402_s6, 128, %s4411_s4, %s4413_s30, %s5188_s22, %s5188_s22, %s5187_s13  }
  0x6a   : > { %s4451_s18 = scalar_lea.hbm %s5114_s2, %s2898_s20  ;;  %s5189_s28 = sshll.u32 %s4373_s23, 3 }
  0x6b   : > { %s397_s26 = scalar_lea.vmem [#allocation7], %s5189_s28  ;;  %s4199_s9 = smov [#allocation10]  }
  0x6c   : > { %s406_s1 = sshll.u32 %s397_s26, 4  ;;  %s313_s11 = sshll.u32 %s4199_s9, 4  ;;  %s4455_s1 = int_to_ptr.vmem [resolvable:$true] %s406_s1  ;;  %s314_s11 = int_to_ptr.vmem [resolvable:$true] %s313_s11 }
  0x6d   : > { %s4200_s12 = smov [#allocation11]   ;;  %s3967_s4 = scalar_lea.hbm %s5117_s5, 9216 }
  0x6e   : > { %s329_s17 = sshll.u32 %s4200_s12, 4  ;;  %p3968_p0 = scmp.ne.s32.totalorder %s5117_s5, %s3967_s4  ;;  %s330_s17 = int_to_ptr.vmem [resolvable:$true] %s329_s17 }
  0x6f   : > { %p5190_p2 = scmp.ne.s32.totalorder %s5178_s25, 0  ;;  %p3974_p5 = scmp.lt.u32.totalorder %s3967_s4, %s5117_s5 }
  0x71   : > { %p3970_p10 = pnand %p3968_p0, %p5190_p2 }
  0x73   : > { %p3971_p3 = pneg %p3970_p10 }
  0x75   : > { %p3976_p7 = pnand %p3974_p5, %p3971_p3 }
  0x77   : > { %3979 = shalt.err (!%p3976_p7)
}
  0x78   : > { %s3980_s9 = scalar_lea.vmem %s314_s11, 9216  ;;  %p3988_p6 = scmp.lt.s32.totalorder %s314_s11, %s314_s11 }
  0x79   : > { %p3981_p9 = scmp.ne.s32.totalorder %s314_s11, %s3980_s9  ;;  %p3989_p11 = scmp.lt.s32.totalorder %s3980_s9, %s3980_s9 }
  0x7b   : > { %p3983_p12 = pnand %p3981_p9, %p5190_p2  ;;  %p3990_p13 = por %p3989_p11, %p3988_p6 }
  0x7d   : > { %p3984_p1 = pneg %p3983_p12 }
  0x7f   : > { %p3991_p8 = pnand %p3990_p13, %p3984_p1 }
  0x81   : > { %3994 = shalt.err (!%p3991_p8)
}
  0x82   : > { %p5191_p0 = scmp.ne.s32.totalorder %s5176_s27, 0  ;;  %s3995_s28 = scalar_lea.hbm %s5119_s7, 1024 }
  0x83   : > { %p3996_p10 = scmp.ne.s32.totalorder %s5119_s7, %s3995_s28  ;;  %p4002_p5 = scmp.lt.u32.totalorder %s3995_s28, %s5119_s7 }
  0x84   : > { %3696 = dma.hbm_to_vmem [thread:$0]  (!%p5191_p0), %s5117_s5, 9216, %s314_s11, [#allocation9], %s5188_s22, %s5188_s22, %s5187_s13  }
  0x85   : > { %p3998_p8 = pnand %p3996_p10, %p5190_p2 }
  0x87   : > { %p3999_p3 = pneg %p3998_p8 }
  0x89   : > { %p4004_p7 = pnand %p4002_p5, %p3999_p3 }
  0x8b   : > { %4007 = shalt.err (!%p4004_p7)
}
  0x8c   : > { %s4008_s20 = scalar_lea.vmem %s330_s17, 1024  ;;  %p4016_p6 = scmp.lt.s32.totalorder %s330_s17, %s330_s17 }
  0x8d   : > { %p4009_p9 = scmp.ne.s32.totalorder %s330_s17, %s4008_s20  ;;  %p4017_p11 = scmp.lt.s32.totalorder %s4008_s20, %s4008_s20 }
  0x8f   : > { %p4011_p12 = pnand %p4009_p9, %p5190_p2  ;;  %p4018_p13 = por %p4017_p11, %p4016_p6 }
  0x91   : > { %p4012_p1 = pneg %p4011_p12 }
  0x93   : > { %p4019_p4 = pnand %p4018_p13, %p4012_p1 }
  0x95   : > { %4022 = shalt.err (!%p4019_p4)
}
  0x96   : > { %3699 = dma.hbm_to_vmem [thread:$0]  (!%p5191_p0), %s5119_s7, 1024, %s330_s17, [#allocation12], %s5188_s22, %s5188_s22, %s5187_s13  }
  0x97   : > { %s2890_s25 = sshll.u32 %s4373_s23, 6  ;;  %s3035_s9 = sshll.u32 %s4185_s14, 4 }
  0x98   : > { %s2893_s10 = sshll.u32 %s4189_s15, 5  ;;  %s350_s21 = scalar_lea.vmem [#allocation2], %s2890_s25 }
  0x99   : > { %s357_s12 = sadd.s32 %s3035_s9, %s2893_s10  ;;  %s360_s29 = sshll.u32 %s350_s21, 4  ;;  %s4502_s29 = int_to_ptr.vmem [resolvable:$true] %s360_s29 }
  0x9a   : > { %s2894_s28 = sshll.u32 %s357_s12, 6  ;;  %s347_s3 = scalar_lea.sflag [#allocation3], %s4373_s23 }
  0x9b   : > { %s4507_s4 = scalar_lea.hbm %s5112_s0, %s2894_s28  ;;  %p5192_p2 = scmp.ne.s32.totalorder %s5186_s16, 0 }
  0x9c   : > { %s4023_s17 = scalar_lea.hbm %s4507_s4, 1024  ;;  %s4028_s11 = scalar_lea.hbm %s5112_s0, 4096 }
  0x9d   : > { %p4024_p4 = scmp.ne.s32.totalorder %s4507_s4, %s4023_s17  ;;  %p4029_p8 = scmp.lt.u32.totalorder %s4507_s4, %s5112_s0 }
  0x9e   : > { %p4030_p3 = scmp.lt.u32.totalorder %s4028_s11, %s4023_s17  ;;  %p4032_p7 = scmp.lt.u32.totalorder %s4023_s17, %s4507_s4 }
  0x9f   : > { %p4026_p0 = pnand %p4024_p4, %p5192_p2 }
  0xa0   : > { %p4031_p5 = por %p4030_p3, %p4029_p8 }
  0xa1   : > { %p4027_p10 = pneg %p4026_p0 }
  0xa2   : > { %p4033_p9 = por %p4032_p7, %p4031_p5 }
  0xa4   : > { %p4034_p12 = pnand %p4033_p9, %p4027_p10 }
  0xa6   : > { %4037 = shalt.err (!%p4034_p12)
}
  0xa7   : > { %s4038_s9 = scalar_lea.vmem %s4502_s29, 1024  ;;  %s4201_s10 = smov [#allocation2]  }
  0xa8   : > { %p4039_p1 = scmp.ne.s32.totalorder %s4502_s29, %s4038_s9  ;;  %s4043_s12 = sshll.u32 %s4201_s10, 4  ;;  %s4044_s12 = int_to_ptr.vmem [resolvable:$false] %s4043_s12 }
  0xa9   : > { %s4045_s21 = scalar_lea.vmem %s4044_s12, 2048  ;;  %p4046_p13 = scmp.lt.s32.totalorder %s4502_s29, %s4044_s12 }
  0xaa   : > { %p4041_p6 = pnand %p4039_p1, %p5192_p2  ;;  %p4047_p4 = scmp.lt.s32.totalorder %s4045_s21, %s4038_s9 }
  0xac   : > { %p4042_p11 = pneg %p4041_p6  ;;  %p4048_p0 = por %p4047_p4, %p4046_p13 }
  0xae   : > { %p4049_p8 = pnand %p4048_p0, %p4042_p11 }
  0xb0   : > { %4052 = shalt.err (!%p4049_p8)
}
  0xb1   : > { %p5193_p10 = scmp.ne.s32.totalorder %s5181_s8, 0  ;;  %s4053_s28 = scalar_lea.hbm %s4451_s18, 128 }
  0xb2   : > { %p4054_p3 = scmp.ne.s32.totalorder %s4451_s18, %s4053_s28  ;;  %s4058_s17 = scalar_lea.hbm %s5114_s2, 512 }
  0xb3   : > { %3703 = dma.hbm_to_vmem [thread:$0]  (!%p5193_p10), %s4507_s4, 1024, %s4502_s29, %s347_s3, %s5188_s22, %s5188_s22, %s5187_s13  }
  0xb4   : > { %p4056_p5 = pnand %p4054_p3, %p5192_p2  ;;  %p4059_p9 = scmp.lt.u32.totalorder %s4451_s18, %s5114_s2 }
  0xb5   : > { %p4060_p12 = scmp.lt.u32.totalorder %s4058_s17, %s4053_s28  ;;  %p4062_p6 = scmp.lt.u32.totalorder %s4053_s28, %s4451_s18 }
  0xb6   : > { %p4057_p7 = pneg %p4056_p5 }
  0xb7   : > { %p4061_p1 = por %p4060_p12, %p4059_p9 }
  0xb9   : > { %p4063_p11 = por %p4062_p6, %p4061_p1 }
  0xbb   : > { %p4064_p13 = pnand %p4063_p11, %p4057_p7 }
  0xbd   : > { %4067 = shalt.err (!%p4064_p13)
}
  0xbe   : > { %s4068_s23 = scalar_lea.vmem %s4455_s1, 128  ;;  %s4202_s29 = smov [#allocation7]  }
  0xbf   : > { %p4069_p4 = scmp.ne.s32.totalorder %s4455_s1, %s4068_s23  ;;  %s4073_s4 = sshll.u32 %s4202_s29, 4  ;;  %s4074_s4 = int_to_ptr.vmem [resolvable:$false] %s4073_s4 }
  0xc0   : > { %s4075_s3 = scalar_lea.vmem %s4074_s4, 256  ;;  %p4076_p3 = scmp.lt.s32.totalorder %s4455_s1, %s4074_s4 }
  0xc1   : > { %p4071_p0 = pnand %p4069_p4, %p5192_p2  ;;  %p4077_p5 = scmp.lt.s32.totalorder %s4075_s3, %s4068_s23 }
  0xc3   : > { %p4072_p8 = pneg %p4071_p0  ;;  %p4078_p9 = por %p4077_p5, %p4076_p3 }
  0xc5   : > { %p4079_p12 = pnand %p4078_p9, %p4072_p8 }
  0xc7   : > { %4082 = shalt.err (!%p4079_p12)
}
  0xc8   : > { %3709 = dma.hbm_to_vmem [thread:$0]  (!%p5193_p10), %s4451_s18, 128, %s4455_s1, %s4413_s30, %s5188_s22, %s5188_s22, %s5187_s13  }
  0xc9   : > { %p5194_p2 = scmp.ne.s32.totalorder %s5175_s24, 0 }
  0xca   : > { %s5195_s16 = sld [smem:[#allocation20_spill]] (!%p5194_p2)  ;;  %s5196_s11 = sld [smem:[#allocation26_spill]] (!%p5194_p2) }
  0xcb   : > { %418 = sbr.rel (%p5194_p2) target bundleno = 1114 (0x45a), region = 56 }
  0xd0   : > { %s4564_s19 = sand.u32 (!%p5194_p2), 1, %s5195_s16   ;;  %p5197_p7 = scmp.ne.s32.totalorder (!%p5194_p2), %s5196_s11, 0 }
  0xd1   : > { %s2904_s25 = sshll.u32 (!%p5194_p2), %s4564_s19, 6  ;;  %s421_s9 = scalar_lea.sflag (!%p5194_p2), [#allocation3], %s4564_s19 }
  0xd2   : > { %s4570_s8 = scalar_lea.vmem [#allocation2], %s2904_s25 }
  0xd3   : > { %4144 = dma.done.wait (%p5197_p7), %s421_s9, 1024  }
  0xd4   : > { %4146 = vsyncadd (%p5197_p7), %s421_s9, 4294966272  ;;  %s5198_s1 = sld [smem:[#allocation25_spill]]  ;;  %s2905_s30 = sshll.u32 %s4564_s19, 3 }
  0xd5   : > { %s4578_s22 = scalar_lea.vmem [#allocation5], %s2905_s30 }
  0xda   : > { %s429_s24 = sand.u32 1, %s5198_s1  }
  0xdb   : > { %s430_s13 = scalar_lea.sflag [#allocation6], %s429_s24 }
  0xdc   : > { %4148 = dma.done.wait (%p5197_p7), %s430_s13, 256  }
  0xdd   : > { %4150 = vsyncadd (%p5197_p7), %s430_s13, 4294967040  ;;  %s4584_s18 = scalar_lea.vmem [#allocation7], %s2905_s30  ;;  %p5199_p10 = scmp.eq.s32.totalorder %s5198_s1, 0 }
  0xdf   : > { %4152 = dma.done.wait (%p5199_p10), [#allocation9], 10240   ;;  %p5200_p1 = pmov %p5199_p10 }
  0xe1   : > { %4154 = vsyncadd (%p5200_p1), [#allocation9], 4294957056  ;;  %p5201_p6 = pmov %p5200_p1 }
  0xe2   : > { %p5202_p11 = pmov %p5200_p1 }
  0xe3   : > { %4156 = dma.done.wait (%p5201_p6), [#allocation12], 1024  }
  0xe4   : > { %4158 = vsyncadd (%p5202_p11), [#allocation12], 4294966272  ;;  %v4203_v0 = vmov 0.0   ;;  %vm4204_vm0 = vmmov 0   ;;  %v3795_v1 = vld [vmem:[#allocation8] sm:$0xff]   ;;  %v3796_v2 = vld [vmem:[#allocation8 + $0x8] sm:$0xff]  }
  0xe5   : > { %3422 = vmatprep.subr.bf16.mxu1 %v4203_v0  ;;  %3438 = vmatprep.mubr.msk.bf16.mxu1 %vm4204_vm0, %v4203_v0  ;;  %v3797_v3 = vld [vmem:[#allocation8 + $0x10] sm:$0xff]   ;;  %v3798_v4 = vld [vmem:[#allocation8 + $0x18] sm:$0xff]   ;;  %v502_v5 = vld [vmem:[%s4570_s8] sm:$0xff]   ;;  %s5203_s10 = sld [smem:[#allocation22_spill]]  ;;  %s5204_s27 = sld [smem:[#allocation34_spill]]  ;;  %vm964_vm2 = vcmask 1040384  }
  0xe6   : > { %3390 = vmatprep.subr.bf16.mxu0 %v3795_v1  ;;  %3423 = vmatpush3.bf16.msra.mxu1 %v3795_v1  ;;  %v3799_v6 = vld [vmem:[#allocation8 + $0x20] sm:$0xff]   ;;  %v3800_v7 = vld [vmem:[#allocation8 + $0x28] sm:$0xff]   ;;  %v3801_v8 = vld [vmem:[#allocation8 + $0x30] sm:$0xff]   ;;  %vm965_vm3 = vsmask.f32 256  ;;  %vm1108_vm5 = vcmask 1046528  }
  0xe7   : > { %3391 = vmatpush3.bf16.msra.mxu0 %v3795_v1  ;;  %3424 = vmatprep.subr.bf16.mxu1 %v4203_v0  ;;  %v3802_v9 = vld [vmem:[#allocation8 + $0x38] sm:$0xff]   ;;  %v504_v10 = vld [vmem:[%s4570_s8 + $0x8] sm:$0xff]   ;;  %v3815_v11 = vld [vmem:[#allocation10 + $0x100] sm:$0xff]   ;;  %vm987_vm6 = vsmask.f32 7424  ;;  %s5209_s20 = sld [smem:[#allocation35_spill]] }
  0xe8   : > { %3392 = vmatprep.subr.bf16.mxu0 %v3796_v2  ;;  %3406 = vmatprep.mubr.bf16.mxu0 %v502_v5  ;;  %v506_v12 = vld [vmem:[%s4570_s8 + $0x10] sm:$0xff]   ;;  %v3809_v13 = vld [vmem:[%s4578_s22] sm:$0xff]   ;;  %v508_v17 = vld [vmem:[%s4570_s8 + $0x18] sm:$0xff]   ;;  %s5210_s4 = sld [smem:[#allocation36_spill]]  ;;  %s5026_s3 = scalar_lea.vmem [#allocation13], %s2904_s25 }
  0xe9   : > { %v3816_v14 = vld [vmem:[#allocation10 + $0xc0] sm:$0xff]   ;;  %v3818_v15 = vld [vmem:[#allocation10 + $0x108] sm:$0xff]   ;;  %v514_v20 = vld [vmem:[%s4570_s8 + $0x30] sm:$0xff]   ;;  %s5211_s16 = sld [smem:[#allocation23_spill]]  ;;  %s2715_s1 = sshll.u32 %s5026_s3, 4  ;;  %s5051_s1 = int_to_ptr.vmem [resolvable:$true] %s2715_s1 }
  0xea   : > { %3425 = vmatpush3.bf16.msra.mxu1 %v3796_v2  ;;  %v3819_v16 = vld [vmem:[#allocation10 + $0xc8] sm:$0xff]   ;;  %v510_v18 = vld [vmem:[%s4570_s8 + $0x20] sm:$0xff]   ;;  %v516_v21 = vld [vmem:[%s4570_s8 + $0x38] sm:$0xff]   ;;  %s5213_s22 = sld [smem:[#allocation37_spill]]  ;;  %s4205_s21 = smov [#allocation13]  }
  0xeb   : > { %3393 = vmatpush3.bf16.msra.mxu0 %v3796_v2  ;;  %3426 = vmatprep.subr.bf16.mxu1 %v4203_v0  ;;  %v512_v19 = vld [vmem:[%s4570_s8 + $0x28] sm:$0xff]   ;;  %v3813_v22 = vld [vmem:[#allocation10 + $0x140] sm:$0xff]   ;;  %v3812_v23 = vld [vmem:[%s4584_s18] sm:$0xff]   ;;  %p852_p13 = scmp.gt.s32.totalorder %s5203_s10, 0  ;;  %p858_p4 = scmp.lt.s32.totalorder %s5203_s10, 1 }
  0xec   : > { %3394 = vmatprep.subr.bf16.mxu0 %v3797_v3  ;;  %v3814_v24 = vld [vmem:[#allocation10 + $0x148] sm:$0xff]   ;;  %v3817_v25 = vld [vmem:[#allocation10 + $0x150] sm:$0xff]   ;;  %v3820_v26 = vld [vmem:[#allocation10 + $0x158] sm:$0xff]   ;;  %s3052_s11 = sshll.u32 %s5203_s10, 4  ;;  %s2699_s10 = scalar_lea.sflag [#allocation4], %s4564_s19 }
  0xed   : > { %v3821_v27 = vld [vmem:[#allocation10 + $0x110] sm:$0xff]   ;;  %v3823_v29 = vld [vmem:[#allocation10 + $0x160] sm:$0xff]   ;;  %v3824_v30 = vld [vmem:[#allocation10 + $0x118] sm:$0xff]   ;;  %s853_s12 = scalar_select %p852_p13, 1, 0 }
  0xee   : > { %3427 = vmatpush3.bf16.msra.mxu1 %v3797_v3  ;;  %v3822_v28 = vld [vmem:[#allocation10 + $0xd0] sm:$0xff]   ;;  %v3825_v31 = vld [vmem:[#allocation10 + $0xd8] sm:$0xff]   ;;  %v3826_v32 = vld [vmem:[#allocation10 + $0x168] sm:$0xff]   ;;  %s4830_s26 = scalar_select %p858_p4, 1, 0 }
  0xef   : > { %3395 = vmatpush3.bf16.msra.mxu0 %v3797_v3  ;;  %3428 = vmatprep.subr.bf16.mxu1 %v4203_v0  ;;  %v3827_v33 = vld [vmem:[#allocation10 + $0x120] sm:$0xff]   ;;  %v3829_v35 = vld [vmem:[#allocation10 + $0x170] sm:$0xff]   ;;  %v3830_v36 = vld [vmem:[#allocation10 + $0x128] sm:$0xff]   ;;  %v854_v46 = vstv %s853_s12  ;;  %s3031_s25 = sshll.u32 %s5211_s16, 5  ;;  %s4083_s12 = scalar_lea.vmem %s5051_s1, 1024 }
  0xf0   : > { %3396 = vmatprep.subr.bf16.mxu0 %v3798_v4  ;;  %v3828_v34 = vld [vmem:[#allocation10 + $0xe0] sm:$0xff]   ;;  %v3831_v37 = vld [vmem:[#allocation10 + $0xe8] sm:$0xff]   ;;  %v3832_v38 = vld [vmem:[#allocation10 + $0x178] sm:$0xff]   ;;  %vm4632_vm1 = vcmp.eq.s32.totalorder %v854_v46, 1  ;;  %s2712_s9 = sadd.s32 %s3052_s11, %s3031_s25  ;;  %p4084_p0 = scmp.ne.s32.totalorder %s5051_s1, %s4083_s12 }
  0xf1   : > { %v3833_v39 = vld [vmem:[#allocation10 + $0x130] sm:$0xff]   ;;  %v3835_v41 = vld [vmem:[#allocation10 + $0x40] sm:$0xff]   ;;  %v3836_v42 = vld [vmem:[#allocation10 + $0x138] sm:$0xff]   ;;  %s3032_s24 = sshll.u32 %s2712_s9, 6  ;;  %s4087_s28 = sshll.u32 %s4205_s21, 4  ;;  %s4088_s28 = int_to_ptr.vmem [resolvable:$false] %s4087_s28 }
  0xf2   : > { %3429 = vmatpush3.bf16.msra.mxu1 %v3798_v4  ;;  %v3834_v40 = vld [vmem:[#allocation10 + $0xf0] sm:$0xff]   ;;  %v3838_v43 = vld [vmem:[#allocation10 + $0xf8] sm:$0xff]   ;;  %v3853_v44 = vld [vmem:[#allocation10 + $0x1c0] sm:$0xff]   ;;  %s5056_s18 = scalar_lea.hbm %s5213_s22, %s3032_s24  ;;  %p4090_p9 = scmp.lt.s32.totalorder %s5051_s1, %s4088_s28 }
  0xf3   : > { %3397 = vmatpush3.bf16.msra.mxu0 %v3798_v4  ;;  %3430 = vmatprep.subr.bf16.mxu1 %v4203_v0  ;;  %v4628_v45 = vld [vmem:[%s5204_s27] ss:$0 sm:$0xff]  ;;  %vm4648_vm4 = vmand %vm964_vm2, %vm965_vm3  ;;  %s4089_s27 = scalar_lea.vmem %s4088_s28, 2048 }
  0xf4   : > { %3398 = vmatprep.subr.bf16.mxu0 %v3799_v6  ;;  %p4091_p12 = scmp.lt.s32.totalorder %s4089_s27, %s4083_s12 }
  0xf6   : > { %3431 = vmatpush3.bf16.msra.mxu1 %v3799_v6  ;;  %p4092_p2 = por %p4091_p12, %p4090_p9 }
  0xf7   : > { %3399 = vmatpush3.bf16.msra.mxu0 %v3799_v6  ;;  %3432 = vmatprep.subr.bf16.mxu1 %v4203_v0 }
  0xf8   : > { %3400 = vmatprep.subr.bf16.mxu0 %v3800_v7 }
  0xfa   : > { %3433 = vmatpush3.bf16.msra.mxu1 %v3800_v7 }
  0xfb   : > { %3401 = vmatpush3.bf16.msra.mxu0 %v3800_v7  ;;  %3434 = vmatprep.subr.bf16.mxu1 %v4203_v0 }
  0xfc   : > { %3402 = vmatprep.subr.bf16.mxu0 %v3801_v8 }
  0xfe   : > { %3435 = vmatpush3.bf16.msra.mxu1 %v3801_v8 }
  0xff   : > { %3403 = vmatpush3.bf16.msra.mxu0 %v3801_v8  ;;  %3436 = vmatprep.subr.bf16.mxu1 %v4203_v0 }
 0x100   : > { %3404 = vmatprep.subr.bf16.mxu0 %v3802_v9 }
 0x102   : > { %3437 = vmatpush3.bf16.msra.mxu1 %v3802_v9 }
 0x103   : > { %3405 = vmatpush3.bf16.msra.mxu0 %v3802_v9  ;;  %3134 = vmatprep.subr.bf16.mxu1 %v3815_v11 }
 0x104   : > { %3442 = vmatprep.subr.bf16.mxu0 %v4203_v0 }
 0x105   : > { %3439 = vmatmul.mubr.bf16.vlgmr.msra.gmra.mrb[0].mxu1 %v3809_v13 }
 0x106   : > { %3407 = vmatmul.mubr.bf16.vlgmr.msra.gmra.mrb[0].mxu0 %v504_v10  ;;  %3135 = vmatpush3.bf16.msra.mxu1 %v3816_v14 }
 0x107   : > { %3410 = vmatprep.mubr.bf16.mxu0 %v506_v12  ;;  %3443 = vmatpush3.bf16.msra.mxu0 %v3795_v1 }
 0x108   : > { %3444 = vmatprep.subr.bf16.mxu0 %v4203_v0  ;;  %3136 = vmatprep.subr.bf16.mxu1 %v3818_v15 }
 0x10a   : > { %3137 = vmatpush3.bf16.msra.mxu1 %v3819_v16 }
 0x10b   : > { %3445 = vmatpush3.bf16.msra.mxu0 %v3796_v2  ;;  %3138 = vmatprep.subr.bf16.mxu1 %v3821_v27 }
 0x10c   : > { %3446 = vmatprep.subr.bf16.mxu0 %v4203_v0 }
 0x10e   : > { %3411 = vmatmul.mubr.bf16.gmra.mrb[4].mxu0 %v508_v17  ;;  %3139 = vmatpush3.bf16.msra.mxu1 %v3822_v28 }
 0x10f   : > { %3414 = vmatprep.mubr.bf16.mxu0 %v510_v18  ;;  %3447 = vmatpush3.bf16.msra.mxu0 %v3797_v3 }
 0x110   : > { %3448 = vmatprep.subr.bf16.mxu0 %v4203_v0  ;;  %3140 = vmatprep.subr.bf16.mxu1 %v3824_v30 }
 0x112   : > { %3141 = vmatpush3.bf16.msra.mxu1 %v3825_v31 }
 0x113   : > { %3449 = vmatpush3.bf16.msra.mxu0 %v3798_v4  ;;  %3142 = vmatprep.subr.bf16.mxu1 %v3827_v33 }
 0x114   : > { %3450 = vmatprep.subr.bf16.mxu0 %v4203_v0 }
 0x116   : > { %3415 = vmatmul.mubr.bf16.gmra.mrb[8].mxu0 %v512_v19  ;;  %3143 = vmatpush3.bf16.msra.mxu1 %v3828_v34 }
 0x117   : > { %3418 = vmatprep.mubr.bf16.mxu0 %v514_v20  ;;  %3451 = vmatpush3.bf16.msra.mxu0 %v3799_v6 }
 0x118   : > { %3452 = vmatprep.subr.bf16.mxu0 %v4203_v0  ;;  %3144 = vmatprep.subr.bf16.mxu1 %v3830_v36 }
 0x11a   : > { %3145 = vmatpush3.bf16.msra.mxu1 %v3831_v37 }
 0x11b   : > { %3453 = vmatpush3.bf16.msra.mxu0 %v3800_v7  ;;  %3146 = vmatprep.subr.bf16.mxu1 %v3833_v39 }
 0x11c   : > { %3454 = vmatprep.subr.bf16.mxu0 %v4203_v0 }
 0x11e   : > { %3419 = vmatmul.mubr.bf16.gmra.mrb[12].mxu0 %v516_v21  ;;  %3147 = vmatpush3.bf16.msra.mxu1 %v3834_v40 }
 0x11f   : > { %3455 = vmatpush3.bf16.msra.mxu0 %v3801_v8  ;;  %3458 = vmatprep.mubr.msk.bf16.mxu0 %vm4204_vm0, %v4203_v0 }
 0x120   : > { %3456 = vmatprep.subr.bf16.mxu0 %v4203_v0  ;;  %3148 = vmatprep.subr.bf16.mxu1 %v3836_v42 }
 0x122   : > { %3149 = vmatpush3.bf16.msra.mxu1 %v3838_v43 }
 0x123   : > { %3457 = vmatpush3.bf16.msra.mxu0 %v3802_v9  ;;  %3294 = vmatprep.subr.bf16.mxu1 %v3853_v44 }
 0x124   : > { %3462 = vmatprep.subr.bf16.mxu0 %v3813_v22 }
 0x126   : > { %3459 = vmatmul.mubr.bf16.vlgmr.msra.gmra.mrb[16].mxu0 %v3812_v23 }
 0x127   : > { %3463 = vmatpush3.bf16.msra.mxu0 %v3813_v22 }
 0x128   : > { %3464 = vmatprep.subr.bf16.mxu0 %v3814_v24 }
 0x12b   : > { %3465 = vmatpush3.bf16.msra.mxu0 %v3814_v24 }
 0x12c   : > { %3466 = vmatprep.subr.bf16.mxu0 %v3817_v25 }
 0x12f   : > { %3467 = vmatpush3.bf16.msra.mxu0 %v3817_v25 }
 0x130   : > { %3468 = vmatprep.subr.bf16.mxu0 %v3820_v26 }
 0x133   : > { %3469 = vmatpush3.bf16.msra.mxu0 %v3820_v26 }
 0x134   : > { %3470 = vmatprep.subr.bf16.mxu0 %v3823_v29 }
 0x137   : > { %3471 = vmatpush3.bf16.msra.mxu0 %v3823_v29 }
 0x138   : > { %3472 = vmatprep.subr.bf16.mxu0 %v3826_v32 }
 0x13b   : > { %3473 = vmatpush3.bf16.msra.mxu0 %v3826_v32 }
 0x13c   : > { %3474 = vmatprep.subr.bf16.mxu0 %v3829_v35 }
 0x13f   : > { %3475 = vmatpush3.bf16.msra.mxu0 %v3829_v35 }
 0x140   : > { %3476 = vmatprep.subr.bf16.mxu0 %v3832_v38 }
 0x143   : > { %3477 = vmatpush3.bf16.msra.mxu0 %v3832_v38 }
 0x144   : > { %3214 = vmatprep.subr.bf16.mxu0 %v3835_v41 }
 0x1d8   : > { %v792_v47 = vpop.f32.mrb[0].mxu1 }
 0x1d9   : > { %v3408_v48 = vpop.f32.mrb[0].mxu0  ;;  %v793_v49 = vadd.f32 %v4628_v45, %v792_v47  ;;  %v3440_v50 = vpop.f32.mrb[1].mxu1 }
 0x1da   : > { %v680_v51 = vadd.f32 %v3408_v48, %v4628_v45  ;;  %v671_v52 = vpop.f32.mrb[1].mxu0  ;;  %v795_v54 = vpop.f32.mrb[2].mxu1 }
 0x1db   : > { %v672_v55 = vadd.f32 %v4628_v45, %v671_v52  ;;  %v3409_v56 = vpop.f32.mrb[2].mxu0  ;;  %v799_v57 = vmax.f32 %v793_v49, 0.0  ;;  %v796_v58 = vadd.f32 %v4628_v45, %v795_v54  ;;  %v3441_v59 = vpop.f32.mrb[3].mxu1 }
 0x1dc   : > { %v683_v60 = vadd.f32 %v3409_v56, %v4628_v45  ;;  %v674_v61 = vpop.f32.mrb[3].mxu0  ;;  %v736_v1 = vmax.f32 %v680_v51, 0.0 }
 0x1dd   : > { %v675_v62 = vadd.f32 %v4628_v45, %v674_v61  ;;  %v856_v63 = vsel %vm4632_vm1, %v799_v57, 0.0  ;;  %v800_v0 = vmax.f32 %v796_v58, 0.0  ;;  %v734_v3 = vmax.f32 %v672_v55, 0.0  ;;  %v3837_v55 = vld [vmem:[#allocation10] sm:$0xff]   ;;  %v3839_v61 = vld [vmem:[#allocation10 + $0x48] sm:$0xff]  }
 0x1de   : > { %v737_v2 = vmax.f32 %v683_v60, 0.0 }
 0x1df   : > { %v735_v4 = vmax.f32 %v675_v62, 0.0  ;;  %v857_v5 = vsel %vm4632_vm1, %v800_v0, 0.0 }
 0x1e0   : > { %v866_v6 = vpack.c.bf16 %v737_v2, %v736_v1  ;;  %v4644_v7 = vpack.c.bf16 %v857_v5, %v856_v63 }
 0x1e1   : > { %v865_v8 = vpack.c.bf16 %v735_v4, %v734_v3  ;;  %v3412_v9 = vpop.f32.mrb[4].mxu0 }
 0x1e2   : > { %v889_v10 = vshrl.u32 %v866_v6, 16  ;;  %v696_v11 = vadd.f32 %v3412_v9, %v4628_v45  ;;  %v687_v12 = vpop.f32.mrb[5].mxu0  ;;  %v875_v13 = vshrl.u32 %v4644_v7, 16  ;;  %v892_v19 = vshll.u32 %v866_v6, 16  ;;  %v3840_v9 = vld [vmem:[#allocation10 + $0x8] sm:$0xff]  }
 0x1e3   : > { %v882_v15 = vshrl.u32 %v865_v8, 16  ;;  %v688_v16 = vadd.f32 %v4628_v45, %v687_v12  ;;  %v3413_v17 = vpop.f32.mrb[6].mxu0  ;;  %v885_v20 = vshll.u32 %v865_v8, 16  ;;  %v878_v26 = vshll.u32 %v4644_v7, 16 }
 0x1e4   : > { %v891_v18 = vrot.slane %v889_v10, 7  ;;  %v699_v21 = vadd.f32 %v3413_v17, %v4628_v45  ;;  %v690_v22 = vpop.f32.mrb[7].mxu0  ;;  %v740_v24 = vmax.f32 %v696_v11, 0.0  ;;  %v4660_v30 = vrot.slane %v875_v13, 7  ;;  %v3841_v17 = vld [vmem:[#allocation10 + $0x50] sm:$0xff]  }
 0x1e5   : > { %v884_v23 = vrot.slane %v882_v15, 7  ;;  %v691_v25 = vadd.f32 %v4628_v45, %v690_v22  ;;  %v738_v32 = vmax.f32 %v688_v16, 0.0 }
 0x1e6   : > { %v894_v27 = vor.u32 %v892_v19, %v891_v18  ;;  %v4658_v28 = vsel %vm4648_vm4, %v891_v18, 0  ;;  %v741_v29 = vmax.f32 %v699_v21, 0.0 }
 0x1e7   : > { %v887_v31 = vor.u32 %v885_v20, %v884_v23  ;;  %v739_v33 = vmax.f32 %v691_v25, 0.0  ;;  %v978_v34 = vsel %vm4648_vm4, %v884_v23, 0  ;;  %v1116_v38 = vrot.slane %v4658_v28, 1 }
 0x1e8   : > { %v4666_v35 = vsel %vm4648_vm4, 0, %v894_v27  ;;  %v868_v36 = vpack.c.bf16 %v741_v29, %v740_v24  ;;  %v1113_v37 = vrot.slane %v978_v34, 1  ;;  %v1008_v43 = vshll.u32 %v978_v34, 16 }
 0x1e9   : > { %v4671_v39 = vsel %vm4648_vm4, 0, %v887_v31  ;;  %v867_v40 = vpack.c.bf16 %v739_v33, %v738_v32  ;;  %v3416_v41 = vpop.f32.mrb[8].mxu0  ;;  %v1115_v42 = vrot.slane %v4666_v35, 1  ;;  %v1013_v10 = vshrl.u32 %v4666_v35, 16 }
 0x1ea   : > { %v903_v44 = vshrl.u32 %v868_v36, 16  ;;  %v906_v46 = vshll.u32 %v868_v36, 16  ;;  %v712_v47 = vadd.f32 %v3416_v41, %v4628_v45  ;;  %v703_v48 = vpop.f32.mrb[9].mxu0  ;;  %v1112_v49 = vrot.slane %v4671_v39, 1  ;;  %v3842_v36 = vld [vmem:[#allocation10 + $0x10] sm:$0xff]  }
 0x1eb   : > { %v896_v50 = vshrl.u32 %v867_v40, 16  ;;  %v899_v51 = vshll.u32 %v867_v40, 16  ;;  %v704_v52 = vadd.f32 %v4628_v45, %v703_v48  ;;  %v3417_v53 = vpop.f32.mrb[10].mxu0  ;;  %v4678_v54 = vsel %vm1108_vm5, %v1115_v42, %v1116_v38 }
 0x1ec   : > { %v4680_v56 = vrot.slane %v903_v44, 7  ;;  %v744_v57 = vmax.f32 %v712_v47, 0.0  ;;  %v715_v58 = vadd.f32 %v3417_v53, %v4628_v45  ;;  %v706_v59 = vpop.f32.mrb[11].mxu0  ;;  %v4684_v60 = vsel %vm1108_vm5, %v1112_v49, %v1113_v37  ;;  %v3854_v37 = vld [vmem:[#allocation10 + $0x180] sm:$0xff]   ;;  %v3843_v44 = vld [vmem:[#allocation10 + $0x58] sm:$0xff]  }
 0x1ed   : > { %v898_v62 = vrot.slane %v896_v50, 7  ;;  %v742_v63 = vmax.f32 %v704_v52, 0.0  ;;  %v707_v0 = vadd.f32 %v4628_v45, %v706_v59  ;;  %3478 = vmatprep.mubr.bf16.mxu0 %v4684_v60  ;;  %v1001_v1 = vshrl.u32 %v4671_v39, 16  ;;  %v3856_v50 = vld [vmem:[#allocation10 + $0x1c8] sm:$0xff]  }
 0x1ee   : > { %v908_v2 = vor.u32 %v906_v46, %v4680_v56  ;;  %v745_v3 = vmax.f32 %v715_v58, 0.0  ;;  %3479 = vmatmul.mubr.bf16.vlgmr.msra.gmra.mrb[20].mxu0 %v4678_v54  ;;  %v1003_v4 = vshll.u32 %v4671_v39, 16  ;;  %v1010_v5 = vrot.slane %v1008_v43, 1 }
 0x1ef   : > { %v901_v6 = vor.u32 %v899_v51, %v898_v62  ;;  %v743_v8 = vmax.f32 %v707_v0, 0.0  ;;  %3215 = vmatpush3.bf16.msra.mxu0 %v3837_v55  ;;  %v1015_v11 = vshll.u32 %v4666_v35, 16  ;;  %v1020_v16 = vshll.u32 %v4658_v28, 16 }
 0x1f0   : > { %v4696_v12 = vsel %vm4648_vm4, 0, %v908_v2  ;;  %v870_v13 = vpack.c.bf16 %v745_v3, %v744_v57  ;;  %v1005_v15 = vrot.slane %v1003_v4, 1  ;;  %3216 = vmatprep.subr.bf16.mxu0 %v3839_v61  ;;  %v4705_v22 = vsel %vm4648_vm4, %v898_v62, 0  ;;  %v3844_v62 = vld [vmem:[#allocation10 + $0x18] sm:$0xff]   ;;  %v3845_v3 = vld [vmem:[#allocation10 + $0x60] sm:$0xff]  }
 0x1f1   : > { %v4701_v18 = vsel %vm4648_vm4, 0, %v901_v6  ;;  %v869_v19 = vpack.c.bf16 %v743_v8, %v742_v63  ;;  %v3420_v20 = vpop.f32.mrb[12].mxu0  ;;  %v1017_v21 = vrot.slane %v1015_v11, 1  ;;  %v1022_v48 = vrot.slane %v1020_v16, 1  ;;  %v3857_v63 = vld [vmem:[#allocation10 + $0x188] sm:$0xff]   ;;  %v3859_v8 = vld [vmem:[#allocation10 + $0x1d0] sm:$0xff]  }
 0x1f2   : > { %v917_v23 = vshrl.u32 %v870_v13, 16  ;;  %v920_v24 = vshll.u32 %v870_v13, 16  ;;  %v728_v25 = vadd.f32 %v3420_v20, %v4628_v45  ;;  %v1006_v27 = vor.u32 %v1005_v15, %v1001_v1  ;;  %v719_v29 = vpop.f32.mrb[13].mxu0  ;;  %v3846_v20 = vld [vmem:[#allocation10 + $0x20] sm:$0xff]  }
 0x1f3   : > { %v910_v31 = vshrl.u32 %v869_v19, 16  ;;  %v913_v28 = vshll.u32 %v869_v19, 16  ;;  %v720_v32 = vadd.f32 %v4628_v45, %v719_v29  ;;  %3217 = vmatpush3.bf16.msra.mxu0 %v3840_v9  ;;  %v3421_v33 = vpop.f32.mrb[14].mxu0  ;;  %v1018_v34 = vor.u32 %v1017_v21, %v1013_v10  ;;  %v3860_v21 = vld [vmem:[#allocation10 + $0x190] sm:$0xff]   ;;  %v3847_v29 = vld [vmem:[#allocation10 + $0x68] sm:$0xff]  }
 0x1f4   : > { %v4709_v38 = vrot.slane %v917_v23, 7  ;;  %v748_v40 = vmax.f32 %v728_v25, 0.0  ;;  %v4712_v41 = vsel %vm987_vm6, %v1006_v27, %v1010_v5  ;;  %v731_v42 = vadd.f32 %v3421_v33, %v4628_v45  ;;  %v722_v43 = vpop.f32.mrb[15].mxu0  ;;  %3218 = vmatprep.subr.bf16.mxu0 %v3841_v17 }
 0x1f5   : > { %v912_v46 = vrot.slane %v910_v31, 7  ;;  %1433 = vmatprep.mubr.bf16.mxu1 %v4712_v41  ;;  %v746_v47 = vmax.f32 %v720_v32, 0.0  ;;  %v723_v49 = vadd.f32 %v4628_v45, %v722_v43  ;;  %v1118_v53 = vrot.slane %v4701_v18, 1 }
 0x1f6   : > { %v922_v51 = vor.u32 %v920_v24, %v4709_v38  ;;  %1434 = vmatmul.mubr.bf16.vlgmr.msra.gmra.mrb[4].mxu1 %v4671_v39  ;;  %v749_v52 = vmax.f32 %v731_v42, 0.0  ;;  %v1119_v55 = vrot.slane %v4705_v22, 1  ;;  %v4722_v58 = vsel %vm987_vm6, %v1018_v34, %v1022_v48  ;;  %v3862_v34 = vld [vmem:[#allocation10 + $0x1d8] sm:$0xff]  }
 0x1f7   : > { %v915_v57 = vor.u32 %v913_v28, %v912_v46  ;;  %v747_v59 = vmax.f32 %v723_v49, 0.0  ;;  %v4727_v61 = vsel %vm4648_vm4, %v4680_v56, 0  ;;  %3219 = vmatpush3.bf16.msra.mxu0 %v3842_v36  ;;  %3295 = vmatpush3.bf16.msra.mxu1 %v3854_v37  ;;  %v1121_v2 = vrot.slane %v4696_v12, 1  ;;  %v3863_v49 = vld [vmem:[#allocation10 + $0x198] sm:$0xff]  }
 0x1f8   : > { %v872_v0 = vpack.c.bf16 %v749_v52, %v748_v40  ;;  %1441 = vmatprep.mubr.bf16.mxu1 %v4722_v58  ;;  %v4731_v1 = vsel %vm1108_vm5, %v1118_v53, %v1119_v55  ;;  %3220 = vmatprep.subr.bf16.mxu0 %v3843_v44  ;;  %v880_v56 = vor.u32 %v878_v26, %v4660_v30  ;;  %v1122_v6 = vrot.slane %v4727_v61, 1  ;;  %v3849_v53 = vld [vmem:[#allocation10 + $0x70] sm:$0xff]  }
 0x1f9   : > { %v4736_v4 = vsel %vm4648_vm4, 0, %v915_v57  ;;  %v871_v5 = vpack.c.bf16 %v747_v59, %v746_v47  ;;  %3482 = vmatprep.mubr.bf16.mxu0 %v4731_v1  ;;  %3296 = vmatprep.subr.bf16.mxu1 %v3856_v50  ;;  %v4743_v9 = vpop.f32.mrb[16].mxu0  ;;  %v4747_v10 = vsel %vm4648_vm4, 0, %v922_v51  ;;  %v1027_v13 = vshll.u32 %v4701_v18, 16  ;;  %v3848_v47 = vld [vmem:[#allocation10 + $0x28] sm:$0xff]  }
 0x1fa   : > { %v931_v11 = vshrl.u32 %v872_v0, 16  ;;  %v1032_v15 = vshll.u32 %v4705_v22, 16  ;;  %v3460_v7 = vpop.f32.mrb[17].mxu0  ;;  %v4752_v16 = vsel %vm1108_vm5, %v1121_v2, %v1122_v6  ;;  %v1025_v17 = vshrl.u32 %v4701_v18, 16  ;;  %v3850_v6 = vld [vmem:[#allocation10 + $0x30] sm:$0xff]  }
 0x1fb   : > { %v924_v26 = vshrl.u32 %v871_v5, 16  ;;  %3221 = vmatpush3.bf16.msra.mxu0 %v3844_v62  ;;  %v4757_v19 = vsel %vm4648_vm4, %v912_v46, 0  ;;  %3297 = vmatpush3.bf16.msra.mxu1 %v3857_v63  ;;  %v4759_v23 = vpop.f32.mrb[18].mxu0  ;;  %v934_v22 = vshll.u32 %v872_v0, 16  ;;  %v1029_v25 = vrot.slane %v1027_v13, 1  ;;  %v3864_v63 = vld [vmem:[#allocation10 + $0x1e0] sm:$0xff]  }
 0x1fc   : > { %v4761_v24 = vrot.slane %v931_v11, 7  ;;  %3483 = vmatmul.mubr.bf16.gmra.mrb[24].mxu0 %v4752_v16  ;;  %v1124_v27 = vrot.slane %v4736_v4, 1  ;;  %3222 = vmatprep.subr.bf16.mxu0 %v3845_v3  ;;  %v3461_v31 = vpop.f32.mrb[19].mxu0  ;;  %v927_v32 = vshll.u32 %v871_v5, 16  ;;  %v1125_v33 = vrot.slane %v4757_v19, 1  ;;  %v3851_v7 = vld [vmem:[#allocation10 + $0x78] sm:$0xff]  }
 0x1fd   : > { %v926_v28 = vrot.slane %v924_v26, 7  ;;  %3298 = vmatprep.subr.bf16.mxu1 %v3859_v8  ;;  %v1030_v37 = vor.u32 %v1029_v25, %v1025_v17  ;;  %v1034_v40 = vrot.slane %v1032_v15, 1  ;;  %v4771_v42 = vsel %vm4648_vm4, %v4709_v38, 0  ;;  %v3865_v17 = vld [vmem:[#allocation10 + $0x1a0] sm:$0xff]  }
 0x1fe   : > { %v936_v36 = vor.u32 %v934_v22, %v4761_v24  ;;  %1442 = vmatmul.mubr.bf16.gmra.mrb[8].mxu1 %v4666_v35  ;;  %v4774_v44 = vsel %vm1108_vm5, %v1124_v27, %v1125_v33  ;;  %v1127_v46 = vrot.slane %v4747_v10, 1  ;;  %v1039_v48 = vshll.u32 %v4696_v12, 16 }
 0x1ff   : > { %v929_v43 = vor.u32 %v927_v32, %v926_v28  ;;  %3223 = vmatpush3.bf16.msra.mxu0 %v3846_v20  ;;  %3299 = vmatpush3.bf16.msra.mxu1 %v3860_v21  ;;  %v4780_v50 = vsel %vm4648_vm4, 0, %v880_v56  ;;  %v4783_v51 = vsel %vm987_vm6, %v1030_v37, %v1034_v40  ;;  %v1044_v38 = vshll.u32 %v4727_v61, 16  ;;  %v3867_v21 = vld [vmem:[#allocation10 + $0x1e8] sm:$0xff]   ;;  %v3852_v32 = vld [vmem:[#allocation10 + $0x38] sm:$0xff]  }
 0x200   : > { %3486 = vmatprep.mubr.bf16.mxu0 %v4774_v44  ;;  %3224 = vmatprep.subr.bf16.mxu0 %v3847_v29  ;;  %v4789_v52 = vsel %vm4648_vm4, %v926_v28, 0  ;;  %v1128_v57 = vrot.slane %v4771_v42, 1  ;;  %v1037_v59 = vshrl.u32 %v4696_v12, 16  ;;  %v1041_v62 = vrot.slane %v1039_v48, 1  ;;  %v3868_v37 = vld [vmem:[#allocation10 + $0x1a8] sm:$0xff]  }
 0x201   : > { %v4793_v55 = vsel %vm4648_vm4, 0, %v929_v43  ;;  %1449 = vmatprep.mubr.bf16.mxu1 %v4783_v51  ;;  %3300 = vmatprep.subr.bf16.mxu1 %v3862_v34  ;;  %v4800_v61 = vsel %vm4648_vm4, 0, %v936_v36  ;;  %v1131_v2 = vrot.slane %v4789_v52, 1  ;;  %v977_v3 = vsel %vm4648_vm4, %v4660_v30, 0 }
 0x202   : > { %v1130_v0 = vrot.slane %v4793_v55, 1  ;;  %v4809_v56 = vsel %vm1108_vm5, %v1127_v46, %v1128_v57  ;;  %v1042_v5 = vor.u32 %v1041_v62, %v1037_v59  ;;  %v989_v8 = vshrl.u32 %v4780_v50, 16  ;;  %v3870_v59 = vld [vmem:[#allocation10 + $0x1b0] sm:$0xff]  }
 0x203   : > { %3225 = vmatpush3.bf16.msra.mxu0 %v3848_v47  ;;  %v991_v11 = vshll.u32 %v4780_v50, 16  ;;  %3301 = vmatpush3.bf16.msra.mxu1 %v3863_v49  ;;  %v1046_v13 = vrot.slane %v1044_v38, 1  ;;  %v996_v30 = vshll.u32 %v977_v3, 16  ;;  %v1051_v26 = vshll.u32 %v4736_v4, 16  ;;  %v3869_v47 = vld [vmem:[#allocation10 + $0x1f0] sm:$0xff]  }
 0x204   : > { %3487 = vmatmul.mubr.bf16.gmra.mrb[28].mxu0 %v4809_v56  ;;  %v4815_v15 = vsel %vm1108_vm5, %v1130_v0, %v1131_v2  ;;  %3226 = vmatprep.subr.bf16.mxu0 %v3849_v53  ;;  %v4826_v25 = vsel %vm4648_vm4, %v4761_v24, 0  ;;  %v1204_v31 = vrot.slane %v4800_v61, 1  ;;  %v1049_v33 = vshrl.u32 %v4736_v4, 16  ;;  %v3855_v24 = vld [vmem:[#allocation10 + $0x80] sm:$0xff]  }
 0x205   : > { %3490 = vmatprep.mubr.bf16.mxu0 %v4815_v15  ;;  %v993_v20 = vrot.slane %v991_v11, 1  ;;  %3302 = vmatprep.subr.bf16.mxu1 %v3864_v63  ;;  %v4821_v22 = vsel %vm987_vm6, %v1042_v5, %v1046_v13  ;;  %v998_v27 = vrot.slane %v996_v30, 1  ;;  %v1053_v29 = vrot.slane %v1051_v26, 1  ;;  %v3873_v26 = vld [vmem:[#allocation10 + $0x1b8] sm:$0xff]  }
 0x206   : > { %1450 = vmatmul.mubr.bf16.gmra.mrb[12].mxu1 %v4701_v18  ;;  %v1056_v34 = vshll.u32 %v4757_v19, 16  ;;  %v1205_v36 = vrot.slane %v4826_v25, 1  ;;  %v1063_v46 = vshll.u32 %v4747_v10, 16  ;;  %v860_v48 = vstv %s4830_s26 }
 0x207   : > { %1457 = vmatprep.mubr.bf16.mxu1 %v4821_v22  ;;  %3227 = vmatpush3.bf16.msra.mxu0 %v3850_v6  ;;  %v994_v28 = vor.u32 %v993_v20, %v989_v8  ;;  %v1054_v43 = vor.u32 %v1053_v29, %v1049_v33  ;;  %v1109_v38 = vrot.slane %v4780_v50, 1  ;;  %v1110_v19 = vrot.slane %v977_v3, 1  ;;  %v3872_v3 = vld [vmem:[#allocation10 + $0x1f8] sm:$0xff]   ;;  %v3861_v29 = vld [vmem:[#allocation10 + $0x90] sm:$0xff]  }
 0x208   : > { %3228 = vmatprep.subr.bf16.mxu0 %v3851_v7  ;;  %3303 = vmatpush3.bf16.msra.mxu1 %v3865_v17  ;;  %v4841_v49 = vsel %vm1108_vm5, %v1204_v31, %v1205_v36  ;;  %v1058_v53 = vrot.slane %v1056_v34, 1  ;;  %v844_v57 = vadd.f32 %v4628_v45, %v4743_v9  ;;  %vm861_vm7 = vcmp.eq.s32.totalorder %v860_v48, 1 }
 0x209   : > { %3304 = vmatprep.subr.bf16.mxu1 %v3867_v21  ;;  %v999_v40 = vsel %vm987_vm6, %v994_v28, %v998_v27  ;;  %v4848_v62 = vsel %vm1108_vm5, %v1109_v38, %v1110_v19  ;;  %v847_v63 = vadd.f32 %v4628_v45, %v4759_v23  ;;  %v1065_v2 = vrot.slane %v1063_v46, 1  ;;  %v3858_v23 = vld [vmem:[#allocation10 + $0x88] sm:$0xff]  }
 0x20a   : > { %v4854_v0 = vsel %vm987_vm6, %v1054_v43, %v1058_v53  ;;  %v850_v5 = vmax.f32 %v844_v57, 0.0  ;;  %v1061_v6 = vshrl.u32 %v4747_v10, 16  ;;  %v1068_v8 = vshll.u32 %v4771_v42, 16  ;;  %v3871_v57 = vld [vmem:[#allocation10 + $0xa0] sm:$0xff]  }
 0x20b   : > { %3229 = vmatpush3.bf16.msra.mxu0 %v3852_v32  ;;  %v851_v9 = vmax.f32 %v847_v63, 0.0  ;;  %v1075_v30 = vshll.u32 %v4793_v55, 16  ;;  %v1080_v28 = vshll.u32 %v4789_v52, 16  ;;  %v1192_v36 = vshll.u32 %v4800_v61, 16 }
 0x20c   : > { %3491 = vmatmul.mubr.bf16.gmra.mrb[32].mxu0 %v4841_v49  ;;  %3494 = vmatprep.subr.bf16.mxu0 %v3855_v24  ;;  %v862_v11 = vsel %vm861_vm7, %v850_v5, 0.0  ;;  %v1066_v45 = vor.u32 %v1065_v2, %v1061_v6  ;;  %v1070_v17 = vrot.slane %v1068_v8, 1  ;;  %v1197_v63 = vshll.u32 %v4826_v25, 16  ;;  %v3874_v5 = vld [vmem:[#allocation10 + $0xa8] sm:$0xff]   ;;  %v3875_v8 = vld [vmem:[#allocation10 + $0xb0] sm:$0xff]   ;;  %v3876_v25 = vld [vmem:[#allocation10 + $0xb8] sm:$0xff]  }
 0x20d   : > { %1771 = vmatprep.mubr.bf16.mxu0 %v999_v40  ;;  %3305 = vmatpush3.bf16.msra.mxu1 %v3868_v37  ;;  %v863_v13 = vsel %vm861_vm7, %v851_v9, 0.0  ;;  %v1077_v27 = vrot.slane %v1075_v30, 1  ;;  %v3866_v37 = vld [vmem:[#allocation10 + $0x98] sm:$0xff]   ;;  %v1194_v53 = vrot.slane %v1192_v36, 1 }
 0x20e   : > { %1458 = vmatmul.mubr.bf16.gmra.mrb[16].mxu1 %v4696_v12  ;;  %3306 = vmatprep.subr.bf16.mxu1 %v3869_v47  ;;  %v873_v7 = vpack.c.bf16 %v863_v13, %v862_v11  ;;  %v4864_v42 = vsel %vm987_vm6, %v1066_v45, %v1070_v17  ;;  %v1082_v47 = vrot.slane %v1080_v28, 1  ;;  %v1199_v9 = vrot.slane %v1197_v63, 1  ;;  %v3877_v11 = vld [vmem:[#allocation10 + $0x200] sm:$0xff]   ;;  %v3892_v13 = vld [vmem:[#allocation11 + $0x38] sm:$0xff]  }
 0x20f   : > { %1465 = vmatprep.mubr.bf16.mxu1 %v4854_v0 }
 0x210   : > { %v938_v20 = vshrl.u32 %v873_v7, 16  ;;  %v941_v21 = vshll.u32 %v873_v7, 16 }
 0x211   : > { %3307 = vmatpush3.bf16.msra.mxu1 %v3870_v59 }
 0x212   : > { %3308 = vmatprep.subr.bf16.mxu1 %v3872_v3  ;;  %v940_v31 = vrot.slane %v938_v20, 7 }
 0x214   : > { %1772 = vmatmul.mubr.bf16.vlgmr.msra.gmra.mrb[36].mxu0 %v4780_v50  ;;  %v1073_v50 = vshrl.u32 %v4793_v55, 16  ;;  %v943_v32 = vor.u32 %v941_v21, %v940_v31 }
 0x215   : > { %3495 = vmatpush3.bf16.msra.mxu0 %v3855_v24  ;;  %1779 = vmatprep.mubr.bf16.mxu0 %v4712_v41  ;;  %v986_v41 = vsel %vm4648_vm4, %v940_v31, 0 }
 0x216   : > { %1466 = vmatmul.mubr.bf16.gmra.mrb[20].mxu1 %v4736_v4  ;;  %3496 = vmatprep.subr.bf16.mxu0 %v3858_v23  ;;  %v1941_v33 = vshll.u32 %v986_v41, 16  ;;  %v1949_v34 = vrot.slane %v986_v41, 1  ;;  %v1078_v24 = vor.u32 %v1077_v27, %v1073_v50  ;;  %v4874_v40 = vsel %vm4648_vm4, 0, %v943_v32 }
 0x217   : > { %1473 = vmatprep.mubr.bf16.mxu1 %v4864_v42  ;;  %3309 = vmatpush3.bf16.msra.mxu1 %v3873_v26  ;;  %v1934_v43 = vshrl.u32 %v4874_v40, 16  ;;  %v1936_v52 = vshll.u32 %v4874_v40, 16  ;;  %v1948_v46 = vrot.slane %v4874_v40, 1 }
 0x218   : > { %v1943_v38 = vrot.slane %v1941_v33, 1  ;;  %v1083_v14 = vsel %vm987_vm6, %v1078_v24, %v1082_v47 }
 0x219   : > { %3497 = vmatpush3.bf16.msra.mxu0 %v3858_v23  ;;  %v1938_v48 = vrot.slane %v1936_v52, 1  ;;  %v4882_v19 = vsel %vm1108_vm5, %v1948_v46, %v1949_v34 }
 0x21a   : > { %3498 = vmatprep.subr.bf16.mxu0 %v3861_v29 }
 0x21b   : > { %v1939_v59 = vor.u32 %v1938_v48, %v1934_v43 }
 0x21c   : > { %1780 = vmatmul.mubr.bf16.gmra.mrb[40].mxu0 %v4671_v39  ;;  %v1190_v39 = vshrl.u32 %v4800_v61, 16 }
 0x21d   : > { %1787 = vmatprep.mubr.bf16.mxu0 %v4722_v58  ;;  %3499 = vmatpush3.bf16.msra.mxu0 %v3861_v29  ;;  %v4889_v2 = vsel %vm987_vm6, %v1939_v59, %v1943_v38 }
 0x21e   : > { %1474 = vmatmul.mubr.bf16.gmra.mrb[24].mxu1 %v4747_v10  ;;  %3500 = vmatprep.subr.bf16.mxu0 %v3866_v37  ;;  %v1195_v3 = vor.u32 %v1194_v53, %v1190_v39 }
 0x21f   : > { %1481 = vmatprep.mubr.bf16.mxu1 %v1083_v14 }
 0x220   : > { %v1200_v6 = vsel %vm987_vm6, %v1195_v3, %v1199_v9 }
 0x221   : > { %3501 = vmatpush3.bf16.msra.mxu0 %v3866_v37 }
 0x222   : > { %3502 = vmatprep.subr.bf16.mxu0 %v3871_v57 }
 0x224   : > { %1788 = vmatmul.mubr.bf16.gmra.mrb[44].mxu0 %v4666_v35 }
 0x225   : > { %1795 = vmatprep.mubr.bf16.mxu0 %v4783_v51  ;;  %3503 = vmatpush3.bf16.msra.mxu0 %v3871_v57 }
 0x226   : > { %1482 = vmatmul.mubr.bf16.gmra.mrb[28].mxu1 %v4793_v55  ;;  %3504 = vmatprep.subr.bf16.mxu0 %v3874_v5 }
 0x227   : > { %1489 = vmatprep.mubr.bf16.mxu1 %v1200_v6 }
 0x229   : > { %3505 = vmatpush3.bf16.msra.mxu0 %v3874_v5 }
 0x22a   : > { %3506 = vmatprep.subr.bf16.mxu0 %v3875_v8 }
 0x22c   : > { %1796 = vmatmul.mubr.bf16.gmra.mrb[48].mxu0 %v4701_v18 }
 0x22d   : > { %1803 = vmatprep.mubr.bf16.mxu0 %v4821_v22  ;;  %3507 = vmatpush3.bf16.msra.mxu0 %v3875_v8 }
 0x22e   : > { %1490 = vmatmul.mubr.bf16.gmra.mrb[32].mxu1 %v4800_v61  ;;  %3508 = vmatprep.subr.bf16.mxu0 %v3876_v25 }
 0x22f   : > { %2177 = vmatprep.mubr.bf16.mxu1 %v4722_v58  ;;  %v3882_v58 = vld [vmem:[#allocation10 + $0x228] sm:$0xff]  }
 0x231   : > { %3509 = vmatpush3.bf16.msra.mxu0 %v3876_v25 }
 0x232   : > { %3526 = vmatprep.subr.bf16.mxu0 %v3877_v11 }
 0x234   : > { %1804 = vmatmul.mubr.bf16.gmra.mrb[52].mxu0 %v4696_v12 }
 0x235   : > { %1811 = vmatprep.mubr.bf16.mxu0 %v4854_v0 }
 0x236   : > { %2178 = vmatmul.mubr.bf16.vlgmr.msra.gmra.mrb[36].mxu1 %v4666_v35  ;;  %v3878_v35 = vld [vmem:[#allocation10 + $0x208] sm:$0xff]  }
 0x237   : > { %2185 = vmatprep.mubr.bf16.mxu1 %v4783_v51  ;;  %v3885_v51 = vld [vmem:[#allocation11] sm:$0xff]  }
 0x238   : > { %3558 = vmatprep.subr.bf16.mxu1 %v3885_v51 }
 0x239   : > { %3559 = vmatpush3.bf16.msra.mxu1 %v3885_v51 }
 0x23c   : > { %1812 = vmatmul.mubr.bf16.gmra.mrb[56].mxu0 %v4736_v4 }
 0x23d   : > { %1819 = vmatprep.mubr.bf16.mxu0 %v4864_v42 }
 0x23e   : > { %2186 = vmatmul.mubr.bf16.gmra.mrb[40].mxu1 %v4701_v18  ;;  %v3880_v18 = vld [vmem:[#allocation10 + $0x218] sm:$0xff]  }
 0x23f   : > { %2193 = vmatprep.mubr.bf16.mxu1 %v4821_v22 }
 0x244   : > { %1820 = vmatmul.mubr.bf16.gmra.mrb[60].mxu0 %v4747_v10 }
 0x245   : > { %1827 = vmatprep.mubr.bf16.mxu0 %v1083_v14 }
 0x246   : > { %2194 = vmatmul.mubr.bf16.gmra.mrb[44].mxu1 %v4696_v12  ;;  %v3879_v12 = vld [vmem:[#allocation10 + $0x210] sm:$0xff]  }
 0x247   : > { %2201 = vmatprep.mubr.bf16.mxu1 %v4854_v0 }
 0x24c   : > { %1828 = vmatmul.mubr.bf16.gmra.mrb[64].mxu0 %v4793_v55 }
 0x24d   : > { %3510 = vmatprep.mubr.bf16.mxu0 %v4848_v62 }
 0x24e   : > { %2202 = vmatmul.mubr.bf16.gmra.mrb[48].mxu1 %v4736_v4  ;;  %v3883_v4 = vld [vmem:[#allocation10 + $0x230] sm:$0xff]  }
 0x24f   : > { %2209 = vmatprep.mubr.bf16.mxu1 %v4864_v42 }
 0x254   : > { %3511 = vmatmul.mubr.bf16.vlgmr.msra.gmra.mrb[20].mxu0 %v4684_v60  ;;  %v3881_v60 = vld [vmem:[#allocation10 + $0x220] sm:$0xff]  }
 0x255   : > { %3527 = vmatpush3.bf16.msra.mxu0 %v3877_v11  ;;  %3514 = vmatprep.mubr.bf16.mxu0 %v4678_v54 }
 0x256   : > { %3528 = vmatprep.subr.bf16.mxu0 %v3878_v35  ;;  %2210 = vmatmul.mubr.bf16.gmra.mrb[52].mxu1 %v4747_v10  ;;  %v3884_v10 = vld [vmem:[#allocation10 + $0x238] sm:$0xff]  }
 0x257   : > { %2217 = vmatprep.mubr.bf16.mxu1 %v1083_v14 }
 0x259   : > { %3529 = vmatpush3.bf16.msra.mxu0 %v3878_v35 }
 0x25a   : > { %3530 = vmatprep.subr.bf16.mxu0 %v3879_v12 }
 0x25c   : > { %3515 = vmatmul.mubr.bf16.gmra.mrb[24].mxu0 %v4731_v1 }
 0x25d   : > { %3531 = vmatpush3.bf16.msra.mxu0 %v3879_v12  ;;  %3518 = vmatprep.mubr.bf16.mxu0 %v4752_v16 }
 0x25e   : > { %3532 = vmatprep.subr.bf16.mxu0 %v3880_v18  ;;  %2218 = vmatmul.mubr.bf16.gmra.mrb[56].mxu1 %v4793_v55  ;;  %v3887_v55 = vld [vmem:[#allocation11 + $0x10] sm:$0xff]  }
 0x25f   : > { %2225 = vmatprep.mubr.bf16.mxu1 %v1200_v6 }
 0x261   : > { %3533 = vmatpush3.bf16.msra.mxu0 %v3880_v18 }
 0x262   : > { %3534 = vmatprep.subr.bf16.mxu0 %v3881_v60 }
 0x264   : > { %3519 = vmatmul.mubr.bf16.gmra.mrb[28].mxu0 %v4774_v44 }
 0x265   : > { %3535 = vmatpush3.bf16.msra.mxu0 %v3881_v60  ;;  %3522 = vmatprep.mubr.bf16.mxu0 %v4809_v56 }
 0x266   : > { %3536 = vmatprep.subr.bf16.mxu0 %v3882_v58  ;;  %2226 = vmatmul.mubr.bf16.gmra.mrb[60].mxu1 %v4800_v61  ;;  %v3891_v61 = vld [vmem:[#allocation11 + $0x30] sm:$0xff]  }
 0x267   : > { %2233 = vmatprep.mubr.bf16.mxu1 %v4889_v2 }
 0x269   : > { %3537 = vmatpush3.bf16.msra.mxu0 %v3882_v58 }
 0x26a   : > { %3538 = vmatprep.subr.bf16.mxu0 %v3883_v4 }
 0x26c   : > { %3523 = vmatmul.mubr.bf16.gmra.mrb[32].mxu0 %v4815_v15 }
 0x26d   : > { %3539 = vmatpush3.bf16.msra.mxu0 %v3883_v4  ;;  %3542 = vmatprep.mubr.bf16.mxu0 %v4678_v54  ;;  %v3886_v54 = vld [vmem:[#allocation11 + $0x8] sm:$0xff]  }
 0x26e   : > { %3540 = vmatprep.subr.bf16.mxu0 %v3884_v10  ;;  %2234 = vmatmul.mubr.bf16.gmra.mrb[64].mxu1 %v4874_v40 }
 0x26f   : > { %3560 = vmatprep.subr.bf16.mxu1 %v3886_v54 }
 0x270   : > { %3561 = vmatpush3.bf16.msra.mxu1 %v3886_v54 }
 0x271   : > { %3541 = vmatpush3.bf16.msra.mxu0 %v3884_v10  ;;  %3562 = vmatprep.subr.bf16.mxu1 %v3887_v55 }
 0x274   : > { %3543 = vmatmul.mubr.bf16.vlgmr.msra.gmra.mrb[20].mxu0 %v4731_v1  ;;  %3563 = vmatpush3.bf16.msra.mxu1 %v3887_v55  ;;  %v3888_v1 = vld [vmem:[#allocation11 + $0x18] sm:$0xff]  }
 0x275   : > { %3546 = vmatprep.mubr.bf16.mxu0 %v4752_v16  ;;  %3564 = vmatprep.subr.bf16.mxu1 %v3888_v1  ;;  %v3889_v16 = vld [vmem:[#allocation11 + $0x20] sm:$0xff]  }
 0x278   : > { %3565 = vmatpush3.bf16.msra.mxu1 %v3888_v1 }
 0x279   : > { %3566 = vmatprep.subr.bf16.mxu1 %v3889_v16 }
 0x27c   : > { %3547 = vmatmul.mubr.bf16.gmra.mrb[24].mxu0 %v4774_v44  ;;  %3567 = vmatpush3.bf16.msra.mxu1 %v3889_v16  ;;  %v3890_v44 = vld [vmem:[#allocation11 + $0x28] sm:$0xff]  }
 0x27d   : > { %3550 = vmatprep.mubr.bf16.mxu0 %v4809_v56  ;;  %3568 = vmatprep.subr.bf16.mxu1 %v3890_v44 }
 0x280   : > { %3569 = vmatpush3.bf16.msra.mxu1 %v3890_v44 }
 0x281   : > { %3570 = vmatprep.subr.bf16.mxu1 %v3891_v61 }
 0x284   : > { %3551 = vmatmul.mubr.bf16.gmra.mrb[28].mxu0 %v4815_v15  ;;  %3571 = vmatpush3.bf16.msra.mxu1 %v3891_v61 }
 0x285   : > { %3554 = vmatprep.mubr.bf16.mxu0 %v4841_v49  ;;  %3572 = vmatprep.subr.bf16.mxu1 %v3892_v13 }
 0x288   : > { %3573 = vmatpush3.bf16.msra.mxu1 %v3892_v13 }
 0x28c   : > { %3555 = vmatmul.mubr.bf16.gmra.mrb[32].mxu0 %v4882_v19 }
 0x2c9   : > { %v3150_v56 = vpop.f32.mrb[4].mxu1 }
 0x2ca   : > { %v3151_v15 = vpop.f32.mrb[5].mxu1 }
 0x2cb   : > { %v3152_v22 = vadd.f32 %v3151_v15, %v3150_v56  ;;  %v3153_v49 = vpop.f32.mrb[6].mxu1 }
 0x2cc   : > { %v3154_v62 = vpop.f32.mrb[7].mxu1 }
 0x2cd   : > { %v3155_v0 = vadd.f32 %v3154_v62, %v3153_v49 }
 0x2d1   : > { %v3156_v45 = vpop.f32.mrb[8].mxu1 }
 0x2d2   : > { %v3157_v23 = vpop.f32.mrb[9].mxu1 }
 0x2d3   : > { %v3158_v30 = vadd.f32 %v3157_v23, %v3156_v45  ;;  %v3159_v7 = vpop.f32.mrb[10].mxu1 }
 0x2d4   : > { %v3160_v26 = vpop.f32.mrb[11].mxu1 }
 0x2d5   : > { %v3161_v17 = vadd.f32 %v3160_v26, %v3159_v7 }
 0x2d9   : > { %v3162_v20 = vpop.f32.mrb[12].mxu1 }
 0x2da   : > { %v3163_v21 = vpop.f32.mrb[13].mxu1 }
 0x2db   : > { %v3164_v42 = vadd.f32 %v3163_v21, %v3162_v20  ;;  %v3165_v27 = vpop.f32.mrb[14].mxu1 }
 0x2dc   : > { %v3166_v29 = vpop.f32.mrb[15].mxu1 }
 0x2dd   : > { %v3167_v31 = vadd.f32 %v3166_v29, %v3165_v27 }
 0x2e1   : > { %v3168_v50 = vpop.f32.mrb[16].mxu1 }
 0x2e2   : > { %v3169_v28 = vpop.f32.mrb[17].mxu1 }
 0x2e3   : > { %v3170_v32 = vadd.f32 %v3169_v28, %v3168_v50  ;;  %v3171_v41 = vpop.f32.mrb[18].mxu1 }
 0x2e4   : > { %v3172_v33 = vpop.f32.mrb[19].mxu1 }
 0x2e5   : > { %v3173_v34 = vadd.f32 %v3172_v33, %v3171_v41 }
 0x2e7   : > { %v3230_v24 = vpop.f32.mrb[36].mxu0 }
 0x2e8   : > { %v3231_v36 = vpop.f32.mrb[37].mxu0 }
 0x2e9   : > { %v3232_v37 = vadd.f32 %v3231_v36, %v3230_v24  ;;  %v3233_v40 = vpop.f32.mrb[38].mxu0  ;;  %v3174_v43 = vpop.f32.mrb[20].mxu1 }
 0x2ea   : > { %v3234_v52 = vpop.f32.mrb[39].mxu0  ;;  %v3175_v46 = vpop.f32.mrb[21].mxu1 }
 0x2eb   : > { %v4934_v47 = vadd.f32 %v3232_v37, %v3152_v22  ;;  %v3235_v48 = vadd.f32 %v3234_v52, %v3233_v40  ;;  %v3176_v38 = vadd.f32 %v3175_v46, %v3174_v43  ;;  %v3177_v19 = vpop.f32.mrb[22].mxu1 }
 0x2ec   : > { %v3178_v14 = vpop.f32.mrb[23].mxu1 }
 0x2ed   : > { %v3599_v53 = vadd.f32 %v3235_v48, %v3155_v0  ;;  %v3179_v57 = vadd.f32 %v3178_v14, %v3177_v19 }
 0x2ef   : > { %v3236_v59 = vpop.f32.mrb[40].mxu0 }
 0x2f0   : > { %v3237_v39 = vpop.f32.mrb[41].mxu0 }
 0x2f1   : > { %v3238_v63 = vadd.f32 %v3237_v39, %v3236_v59  ;;  %v3239_v2 = vpop.f32.mrb[42].mxu0  ;;  %v3180_v3 = vpop.f32.mrb[24].mxu1 }
 0x2f2   : > { %v3240_v5 = vpop.f32.mrb[43].mxu0  ;;  %v3181_v9 = vpop.f32.mrb[25].mxu1 }
 0x2f3   : > { %v4936_v6 = vadd.f32 %v3238_v63, %v3158_v30  ;;  %v3241_v8 = vadd.f32 %v3240_v5, %v3239_v2  ;;  %v3182_v25 = vadd.f32 %v3181_v9, %v3180_v3  ;;  %v3183_v11 = vpop.f32.mrb[26].mxu1 }
 0x2f4   : > { %v3184_v35 = vpop.f32.mrb[27].mxu1 }
 0x2f5   : > { %v3596_v12 = vadd.f32 %v3241_v8, %v3161_v17  ;;  %v3185_v18 = vadd.f32 %v3184_v35, %v3183_v11 }
 0x2f7   : > { %v3242_v60 = vpop.f32.mrb[44].mxu0 }
 0x2f8   : > { %v3243_v58 = vpop.f32.mrb[45].mxu0 }
 0x2f9   : > { %v3244_v4 = vadd.f32 %v3243_v58, %v3242_v60  ;;  %v3245_v10 = vpop.f32.mrb[46].mxu0  ;;  %v3186_v51 = vpop.f32.mrb[28].mxu1 }
 0x2fa   : > { %v3246_v54 = vpop.f32.mrb[47].mxu0  ;;  %v3187_v55 = vpop.f32.mrb[29].mxu1 }
 0x2fb   : > { %v4938_v1 = vadd.f32 %v3244_v4, %v3164_v42  ;;  %v3247_v16 = vadd.f32 %v3246_v54, %v3245_v10  ;;  %v3188_v44 = vadd.f32 %v3187_v55, %v3186_v51  ;;  %v3189_v61 = vpop.f32.mrb[30].mxu1 }
 0x2fc   : > { %v3190_v56 = vpop.f32.mrb[31].mxu1 }
 0x2fd   : > { %v4940_v15 = vadd.f32 %v3247_v16, %v3167_v31  ;;  %v3191_v22 = vadd.f32 %v3190_v56, %v3189_v61 }
 0x2ff   : > { %v3248_v49 = vpop.f32.mrb[48].mxu0 }
 0x300   : > { %v3249_v62 = vpop.f32.mrb[49].mxu0 }
 0x301   : > { %v3250_v0 = vadd.f32 %v3249_v62, %v3248_v49  ;;  %v3251_v13 = vpop.f32.mrb[50].mxu0  ;;  %v3192_v45 = vpop.f32.mrb[32].mxu1 }
 0x302   : > { %v3252_v23 = vpop.f32.mrb[51].mxu0  ;;  %v3193_v30 = vpop.f32.mrb[33].mxu1 }
 0x303   : > { %v4942_v7 = vadd.f32 %v3250_v0, %v3170_v32  ;;  %v3253_v26 = vadd.f32 %v3252_v23, %v3251_v13  ;;  %v3194_v17 = vadd.f32 %v3193_v30, %v3192_v45  ;;  %v3195_v20 = vpop.f32.mrb[34].mxu1 }
 0x304   : > { %v3196_v21 = vpop.f32.mrb[35].mxu1 }
 0x305   : > { %v4944_v42 = vadd.f32 %v3253_v26, %v3173_v34  ;;  %v3197_v27 = vadd.f32 %v3196_v21, %v3195_v20 }
 0x307   : > { %v3254_v29 = vpop.f32.mrb[52].mxu0 }
 0x308   : > { %v3255_v31 = vpop.f32.mrb[53].mxu0 }
 0x309   : > { %v3256_v50 = vadd.f32 %v3255_v31, %v3254_v29  ;;  %v3257_v28 = vpop.f32.mrb[54].mxu0  ;;  %v3310_v41 = vpop.f32.mrb[36].mxu1 }
 0x30a   : > { %v3258_v33 = vpop.f32.mrb[55].mxu0  ;;  %v3311_v24 = vpop.f32.mrb[37].mxu1 }
 0x30b   : > { %v4946_v36 = vadd.f32 %v3256_v50, %v3176_v38  ;;  %v3259_v37 = vadd.f32 %v3258_v33, %v3257_v28  ;;  %v3312_v40 = vadd.f32 %v3311_v24, %v3310_v41  ;;  %v3313_v32 = vpop.f32.mrb[38].mxu1 }
 0x30c   : > { %v3314_v43 = vpop.f32.mrb[39].mxu1 }
 0x30d   : > { %v3623_v52 = vadd.f32 %v3259_v37, %v3179_v57  ;;  %v3315_v46 = vadd.f32 %v3314_v43, %v3313_v32  ;;  %v4949_v48 = vadd.f32 %v4934_v47, %v3312_v40 }
 0x30f   : > { %v3260_v34 = vpop.f32.mrb[56].mxu0  ;;  %v4951_v19 = vadd.f32 %v3599_v53, %v3315_v46 }
 0x310   : > { %v3261_v14 = vpop.f32.mrb[57].mxu0 }
 0x311   : > { %v3262_v59 = vadd.f32 %v3261_v14, %v3260_v34  ;;  %v3263_v39 = vpop.f32.mrb[58].mxu0  ;;  %v3316_v63 = vpop.f32.mrb[40].mxu1 }
 0x312   : > { %v3264_v2 = vpop.f32.mrb[59].mxu0  ;;  %v3317_v3 = vpop.f32.mrb[41].mxu1 }
 0x313   : > { %v3614_v38 = vadd.f32 %v3262_v59, %v3182_v25  ;;  %v3265_v5 = vadd.f32 %v3264_v2, %v3263_v39  ;;  %v3318_v9 = vadd.f32 %v3317_v3, %v3316_v63  ;;  %v3319_v8 = vpop.f32.mrb[42].mxu1 }
 0x314   : > { %v3320_v11 = vpop.f32.mrb[43].mxu1 }
 0x315   : > { %v3620_v35 = vadd.f32 %v3265_v5, %v3185_v18  ;;  %v3321_v57 = vadd.f32 %v3320_v11, %v3319_v8  ;;  %v4954_v60 = vadd.f32 %v4936_v6, %v3318_v9 }
 0x317   : > { %v3266_v47 = vpop.f32.mrb[60].mxu0  ;;  %v4956_v58 = vadd.f32 %v3596_v12, %v3321_v57 }
 0x318   : > { %v3267_v53 = vpop.f32.mrb[61].mxu0 }
 0x319   : > { %v3268_v4 = vadd.f32 %v3267_v53, %v3266_v47  ;;  %v3269_v10 = vpop.f32.mrb[62].mxu0  ;;  %v3322_v51 = vpop.f32.mrb[44].mxu1 }
 0x31a   : > { %v3270_v54 = vpop.f32.mrb[63].mxu0  ;;  %v3323_v55 = vpop.f32.mrb[45].mxu1 }
 0x31b   : > { %v3629_v16 = vadd.f32 %v3268_v4, %v3188_v44  ;;  %v3271_v25 = vadd.f32 %v3270_v54, %v3269_v10  ;;  %v3324_v61 = vadd.f32 %v3323_v55, %v3322_v51  ;;  %v3325_v56 = vpop.f32.mrb[46].mxu1 }
 0x31c   : > { %v3326_v49 = vpop.f32.mrb[47].mxu1 }
 0x31d   : > { %v3635_v62 = vadd.f32 %v3271_v25, %v3191_v22  ;;  %v3327_v18 = vadd.f32 %v3326_v49, %v3325_v56  ;;  %v4959_v0 = vadd.f32 %v4938_v1, %v3324_v61 }
 0x31f   : > { %v3272_v6 = vpop.f32.mrb[64].mxu0  ;;  %v4962_v12 = vadd.f32 %v4940_v15, %v3327_v18 }
 0x320   : > { %v3273_v13 = vpop.f32.mrb[65].mxu0 }
 0x321   : > { %v3274_v45 = vadd.f32 %v3273_v13, %v3272_v6  ;;  %v3275_v23 = vpop.f32.mrb[66].mxu0  ;;  %v3328_v30 = vpop.f32.mrb[48].mxu1 }
 0x322   : > { %v3276_v26 = vpop.f32.mrb[67].mxu0  ;;  %v3329_v20 = vpop.f32.mrb[49].mxu1 }
 0x323   : > { %v3626_v44 = vadd.f32 %v3274_v45, %v3194_v17  ;;  %v3277_v21 = vadd.f32 %v3276_v26, %v3275_v23  ;;  %v3330_v29 = vadd.f32 %v3329_v20, %v3328_v30  ;;  %v3331_v31 = vpop.f32.mrb[50].mxu1 }
 0x324   : > { %v3332_v50 = vpop.f32.mrb[51].mxu1 }
 0x325   : > { %v3632_v22 = vadd.f32 %v3277_v21, %v3197_v27  ;;  %v3333_v28 = vadd.f32 %v3332_v50, %v3331_v31  ;;  %v3603_v1 = vadd.f32 %v4942_v7, %v3330_v29 }
 0x327   : > { %v3609_v41 = vadd.f32 %v4944_v42, %v3333_v28 }
 0x329   : > { %v3334_v33 = vpop.f32.mrb[52].mxu1 }
 0x32a   : > { %v3335_v15 = vpop.f32.mrb[53].mxu1 }
 0x32b   : > { %v3336_v24 = vadd.f32 %v3335_v15, %v3334_v33  ;;  %v3337_v37 = vpop.f32.mrb[54].mxu1 }
 0x32c   : > { %v3338_v40 = vpop.f32.mrb[55].mxu1 }
 0x32d   : > { %v3339_v32 = vadd.f32 %v3338_v40, %v3337_v37  ;;  %v4967_v43 = vadd.f32 %v4946_v36, %v3336_v24 }
 0x32f   : > { %v4969_v17 = vadd.f32 %v3623_v52, %v3339_v32 }
 0x331   : > { %v3340_v46 = vpop.f32.mrb[56].mxu1 }
 0x332   : > { %v3341_v34 = vpop.f32.mrb[57].mxu1 }
 0x333   : > { %v3342_v14 = vadd.f32 %v3341_v34, %v3340_v46  ;;  %v3343_v27 = vpop.f32.mrb[58].mxu1 }
 0x334   : > { %v3344_v59 = vpop.f32.mrb[59].mxu1 }
 0x335   : > { %v3345_v39 = vadd.f32 %v3344_v59, %v3343_v27  ;;  %v3615_v7 = vadd.f32 %v3614_v38, %v3342_v14  ;;  %v4978_v38 = vld [vmem:[%s5209_s20] ss:$0 sm:$0xff] }
 0x337   : > { %v3621_v63 = vadd.f32 %v3620_v35, %v3345_v39 }
 0x339   : > { %v3346_v42 = vpop.f32.mrb[60].mxu1 }
 0x33a   : > { %v3347_v2 = vpop.f32.mrb[61].mxu1 }
 0x33b   : > { %v3348_v3 = vadd.f32 %v3347_v2, %v3346_v42  ;;  %v3349_v5 = vpop.f32.mrb[62].mxu1 }
 0x33c   : > { %v3350_v9 = vpop.f32.mrb[63].mxu1 }
 0x33d   : > { %v3351_v8 = vadd.f32 %v3350_v9, %v3349_v5  ;;  %v4971_v11 = vadd.f32 %v3629_v16, %v3348_v3 }
 0x33f   : > { %v4973_v36 = vadd.f32 %v3635_v62, %v3351_v8 }
 0x341   : > { %v3352_v52 = vpop.f32.mrb[64].mxu1 }
 0x342   : > { %v3353_v57 = vpop.f32.mrb[65].mxu1 }
 0x343   : > { %v3354_v47 = vadd.f32 %v3353_v57, %v3352_v52  ;;  %v3355_v53 = vpop.f32.mrb[66].mxu1 }
 0x344   : > { %v3356_v4 = vpop.f32.mrb[67].mxu1 }
 0x345   : > { %v3357_v10 = vadd.f32 %v3356_v4, %v3355_v53  ;;  %v3627_v51 = vadd.f32 %v3626_v44, %v3354_v47 }
 0x347   : > { %v3544_v54 = vpop.f32.mrb[20].mxu0  ;;  %v4980_v35 = vadd.f32 %v3632_v22, %v3357_v10 }
 0x348   : > { %v3592_v55 = vadd.f32 %v4954_v60, %v3544_v54  ;;  %v2276_v16 = vpop.f32.mrb[21].mxu0 }
 0x349   : > { %v3595_v25 = vadd.f32 %v4949_v48, %v2276_v16  ;;  %v3545_v61 = vpop.f32.mrb[22].mxu0 }
 0x34a   : > { %v2364_v56 = vadd.f32 %v3592_v55, %v4978_v38  ;;  %v3598_v49 = vadd.f32 %v4956_v58, %v3545_v61  ;;  %v2279_v62 = vpop.f32.mrb[23].mxu0 }
 0x34b   : > { %v2362_v18 = vadd.f32 %v3595_v25, %v4978_v38  ;;  %v3601_v6 = vadd.f32 %v4951_v19, %v2279_v62 }
 0x34c   : > { %v2365_v13 = vadd.f32 %v3598_v49, %v4978_v38  ;;  %v2380_v23 = vmax.f32 %v2364_v56, 0.0 }
 0x34d   : > { %v2363_v45 = vadd.f32 %v3601_v6, %v4978_v38  ;;  %v2378_v60 = vmax.f32 %v2362_v18, 0.0 }
 0x34e   : > { %v2381_v30 = vmax.f32 %v2365_v13, 0.0 }
 0x34f   : > { %v2379_v26 = vmax.f32 %v2363_v45, 0.0  ;;  %v3548_v20 = vpop.f32.mrb[24].mxu0 }
 0x350   : > { %v2395_v48 = vpack.c.bf16 %v2381_v30, %v2380_v23  ;;  %v3604_v44 = vadd.f32 %v3603_v1, %v3548_v20  ;;  %v2292_v21 = vpop.f32.mrb[25].mxu0  ;;  %v3902_v23 = vld [vmem:[%s4570_s8] sm:$0xff]  }
 0x351   : > { %v3607_v29 = vadd.f32 %v4959_v0, %v2292_v21  ;;  %v3549_v58 = vpop.f32.mrb[26].mxu0  ;;  %v2394_v31 = vpack.c.bf16 %v2379_v26, %v2378_v60  ;;  %v2570_v30 = vunpack.c.l.bf16 %v3902_v23 }
 0x352   : > { %v2368_v50 = vadd.f32 %v3604_v44, %v4978_v38  ;;  %v3610_v22 = vadd.f32 %v3609_v41, %v3549_v58  ;;  %v2295_v19 = vpop.f32.mrb[27].mxu0 }
 0x353   : > { %v2366_v28 = vadd.f32 %v3607_v29, %v4978_v38  ;;  %v3613_v33 = vadd.f32 %v4962_v12, %v2295_v19  ;;  %3574 = vmatprep.mubr.bf16.mxu1 %v2394_v31 }
 0x354   : > { %v2369_v15 = vadd.f32 %v3610_v22, %v4978_v38  ;;  %3575 = vmatmul.mubr.bf16.vlgmr.msra.gmra.mrb[68].mxu1 %v2395_v48  ;;  %v2384_v1 = vmax.f32 %v2368_v50, 0.0  ;;  %v2571_v48 = vunpack.c.h.bf16 %v3902_v23 }
 0x355   : > { %v2367_v24 = vadd.f32 %v3613_v33, %v4978_v38  ;;  %v2382_v40 = vmax.f32 %v2366_v28, 0.0 }
 0x356   : > { %v2385_v37 = vmax.f32 %v2369_v15, 0.0 }
 0x357   : > { %v2383_v0 = vmax.f32 %v2367_v24, 0.0  ;;  %v3552_v32 = vpop.f32.mrb[28].mxu0  ;;  %v3903_v24 = vld [vmem:[%s4570_s8 + $0x18] sm:$0xff]  }
 0x358   : > { %v3616_v46 = vadd.f32 %v3615_v7, %v3552_v32  ;;  %v2308_v34 = vpop.f32.mrb[29].mxu0  ;;  %v2397_v14 = vpack.c.bf16 %v2385_v37, %v2384_v1  ;;  %v2576_v1 = vunpack.c.l.bf16 %v3903_v24  ;;  %v3904_v32 = vld [vmem:[%s4570_s8 + $0x10] sm:$0xff]  }
 0x359   : > { %v3619_v41 = vadd.f32 %v4967_v43, %v2308_v34  ;;  %v3553_v27 = vpop.f32.mrb[30].mxu0  ;;  %v2396_v59 = vpack.c.bf16 %v2383_v0, %v2382_v40 }
 0x35a   : > { %v2372_v12 = vadd.f32 %v3616_v46, %v4978_v38  ;;  %v3622_v39 = vadd.f32 %v3621_v63, %v3553_v27  ;;  %v2311_v42 = vpop.f32.mrb[31].mxu0  ;;  %v2574_v46 = vunpack.c.l.bf16 %v3904_v32  ;;  %v2577_v27 = vunpack.c.h.bf16 %v3903_v24 }
 0x35b   : > { %v2370_v2 = vadd.f32 %v3619_v41, %v4978_v38  ;;  %v3625_v3 = vadd.f32 %v4969_v17, %v2311_v42  ;;  %3578 = vmatprep.mubr.bf16.mxu1 %v2396_v59  ;;  %v2575_v42 = vunpack.c.h.bf16 %v3904_v32 }
 0x35c   : > { %v2373_v5 = vadd.f32 %v3622_v39, %v4978_v38  ;;  %3579 = vmatmul.mubr.bf16.gmra.mrb[72].mxu1 %v2397_v14  ;;  %v2388_v9 = vmax.f32 %v2372_v12, 0.0 }
 0x35d   : > { %v2371_v7 = vadd.f32 %v3625_v3, %v4978_v38  ;;  %v2386_v52 = vmax.f32 %v2370_v2, 0.0 }
 0x35e   : > { %v2389_v8 = vmax.f32 %v2373_v5, 0.0 }
 0x35f   : > { %v2387_v43 = vmax.f32 %v2371_v7, 0.0  ;;  %v3556_v57 = vpop.f32.mrb[32].mxu0 }
 0x360   : > { %v3628_v47 = vadd.f32 %v3627_v51, %v3556_v57  ;;  %v2324_v53 = vpop.f32.mrb[33].mxu0  ;;  %v2399_v4 = vpack.c.bf16 %v2389_v8, %v2388_v9 }
 0x361   : > { %v3631_v63 = vadd.f32 %v4971_v11, %v2324_v53  ;;  %v3557_v10 = vpop.f32.mrb[34].mxu0  ;;  %v2398_v54 = vpack.c.bf16 %v2387_v43, %v2386_v52 }
 0x362   : > { %v2376_v17 = vadd.f32 %v3628_v47, %v4978_v38  ;;  %v3634_v55 = vadd.f32 %v4980_v35, %v3557_v10  ;;  %v2327_v16 = vpop.f32.mrb[35].mxu0  ;;  %v5012_v35 = vld [vmem:[%s5210_s4] ss:$0 sm:$0xff]  ;;  %v3905_v47 = vld [vmem:[%s4570_s8 + $0x28] sm:$0xff]  }
 0x363   : > { %v2374_v25 = vadd.f32 %v3631_v63, %v4978_v38  ;;  %v3637_v61 = vadd.f32 %v4973_v36, %v2327_v16  ;;  %3582 = vmatprep.mubr.bf16.mxu1 %v2398_v54  ;;  %v3901_v36 = vld [vmem:[%s4570_s8 + $0x8] sm:$0xff]   ;;  %v2580_v53 = vunpack.c.l.bf16 %v3905_v47  ;;  %v3906_v54 = vld [vmem:[%s4570_s8 + $0x20] sm:$0xff]  }
 0x364   : > { %v2377_v51 = vadd.f32 %v3634_v55, %v4978_v38  ;;  %3583 = vmatmul.mubr.bf16.gmra.mrb[76].mxu1 %v2399_v4  ;;  %v2392_v11 = vmax.f32 %v2376_v17, 0.0  ;;  %v2572_v45 = vunpack.c.l.bf16 %v3901_v36  ;;  %v2573_v20 = vunpack.c.h.bf16 %v3901_v36 }
 0x365   : > { %v2375_v56 = vadd.f32 %v3637_v61, %v4978_v38  ;;  %v2390_v62 = vmax.f32 %v2374_v25, 0.0  ;;  %v2578_v17 = vunpack.c.l.bf16 %v3906_v54  ;;  %v2581_v61 = vunpack.c.h.bf16 %v3905_v47 }
 0x366   : > { %v2393_v49 = vmax.f32 %v2377_v51, 0.0 }
 0x367   : > { %v2391_v18 = vmax.f32 %v2375_v56, 0.0 }
 0x368   : > { %v2401_v6 = vpack.c.bf16 %v2393_v49, %v2392_v11  ;;  %v2579_v49 = vunpack.c.h.bf16 %v3906_v54 }
 0x369   : > { %v2400_v13 = vpack.c.bf16 %v2391_v18, %v2390_v62 }
 0x36b   : > { %3586 = vmatprep.mubr.bf16.mxu1 %v2400_v13 }
 0x36c   : > { %3587 = vmatmul.mubr.bf16.gmra.mrb[80].mxu1 %v2401_v6 }
 0x427   : > { %v3576_v60 = vpop.f32.mrb[68].mxu1 }
 0x428   : > { %v2516_v38 = vadd.f32 %v3576_v60, %v5012_v35  ;;  %v2507_v26 = vpop.f32.mrb[69].mxu1 }
 0x429   : > { %v2508_v44 = vadd.f32 %v5012_v35, %v2507_v26  ;;  %v3577_v21 = vpop.f32.mrb[70].mxu1 }
 0x42a   : > { %v2588_v29 = vadd.f32 %v2572_v45, %v2516_v38  ;;  %v2519_v58 = vadd.f32 %v3577_v21, %v5012_v35  ;;  %v2510_v31 = vpop.f32.mrb[71].mxu1  ;;  %v3907_v38 = vld [vmem:[%s4570_s8 + $0x38] sm:$0xff]   ;;  %v3908_v21 = vld [vmem:[%s4570_s8 + $0x30] sm:$0xff]   ;;  %s5212_s8 = sld [smem:[#allocation27_spill]] }
 0x42b   : > { %v2586_v50 = vadd.f32 %v2570_v30, %v2508_v44  ;;  %v2511_v22 = vadd.f32 %v5012_v35, %v2510_v31  ;;  %v2584_v26 = vunpack.c.l.bf16 %v3907_v38 }
 0x42c   : > { %v2589_v19 = vadd.f32 %v2573_v20, %v2519_v58  ;;  %v2604_v33 = vmax.f32 %v2588_v29, 0.0  ;;  %v2582_v29 = vunpack.c.l.bf16 %v3908_v21 }
 0x42d   : > { %v2587_v28 = vadd.f32 %v2571_v48, %v2511_v22  ;;  %v2602_v37 = vmax.f32 %v2586_v50, 0.0  ;;  %v2585_v22 = vunpack.c.h.bf16 %v3907_v38 }
 0x42e   : > { %v2605_v15 = vmax.f32 %v2589_v19, 0.0 }
 0x42f   : > { %v2603_v40 = vmax.f32 %v2587_v28, 0.0  ;;  %v3580_v0 = vpop.f32.mrb[72].mxu1 }
 0x430   : > { %v3061_v34 = vpack.c.bf16 %v2605_v15, %v2604_v33  ;;  %v2532_v14 = vadd.f32 %v3580_v0, %v5012_v35  ;;  %v2523_v41 = vpop.f32.mrb[73].mxu1  ;;  %v2583_v15 = vunpack.c.h.bf16 %v3908_v21  ;;  %p5214_p8 = scmp.ne.s32.totalorder %s5212_s8, 0 }
 0x431   : > { %v3056_v59 = vpack.c.bf16 %v2603_v40, %v2602_v37  ;;  %v2524_v12 = vadd.f32 %v5012_v35, %v2523_v41  ;;  %v3581_v39 = vpop.f32.mrb[74].mxu1 }
 0x432   : > { %3093 = vst [vmem:[%s5026_s3 + $0x8] sm:$0xff] %v3061_v34   ;;  %v2592_v2 = vadd.f32 %v2576_v1, %v2532_v14  ;;  %v2535_v3 = vadd.f32 %v3581_v39, %v5012_v35  ;;  %v2526_v5 = vpop.f32.mrb[75].mxu1  ;;  %p4085_p3 = pnand %p4084_p0, %p5214_p8 }
 0x433   : > { %3057 = vst [vmem:[%s5026_s3] sm:$0xff] %v3056_v59   ;;  %v2590_v7 = vadd.f32 %v2574_v46, %v2524_v12  ;;  %v2527_v9 = vadd.f32 %v5012_v35, %v2526_v5 }
 0x434   : > { %v2593_v8 = vadd.f32 %v2577_v27, %v2535_v3  ;;  %v2608_v43 = vmax.f32 %v2592_v2, 0.0  ;;  %p4086_p5 = pneg %p4085_p3 }
 0x435   : > { %v2591_v52 = vadd.f32 %v2575_v42, %v2527_v9  ;;  %v2606_v4 = vmax.f32 %v2590_v7, 0.0 }
 0x436   : > { %v2609_v57 = vmax.f32 %v2593_v8, 0.0  ;;  %p4093_p7 = pnand %p4092_p2, %p4086_p5 }
 0x437   : > { %v2607_v63 = vmax.f32 %v2591_v52, 0.0  ;;  %v3584_v10 = vpop.f32.mrb[76].mxu1 }
 0x438   : > { %v3071_v55 = vpack.c.bf16 %v2609_v57, %v2608_v43  ;;  %v2548_v16 = vadd.f32 %v3584_v10, %v5012_v35  ;;  %v2539_v25 = vpop.f32.mrb[77].mxu1 }
 0x439   : > { %v3066_v51 = vpack.c.bf16 %v2607_v63, %v2606_v4  ;;  %v2540_v56 = vadd.f32 %v5012_v35, %v2539_v25  ;;  %v3585_v11 = vpop.f32.mrb[78].mxu1 }
 0x43a   : > { %3095 = vst [vmem:[%s5026_s3 + $0x18] sm:$0xff] %v3071_v55   ;;  %v2596_v62 = vadd.f32 %v2580_v53, %v2548_v16  ;;  %v2551_v18 = vadd.f32 %v3585_v11, %v5012_v35  ;;  %v2542_v6 = vpop.f32.mrb[79].mxu1 }
 0x43b   : > { %3094 = vst [vmem:[%s5026_s3 + $0x10] sm:$0xff] %v3066_v51   ;;  %v2594_v13 = vadd.f32 %v2578_v17, %v2540_v56  ;;  %v2543_v36 = vadd.f32 %v5012_v35, %v2542_v6 }
 0x43c   : > { %v2597_v45 = vadd.f32 %v2581_v61, %v2551_v18  ;;  %v2612_v30 = vmax.f32 %v2596_v62, 0.0 }
 0x43d   : > { %v2595_v23 = vadd.f32 %v2579_v49, %v2543_v36  ;;  %v2610_v20 = vmax.f32 %v2594_v13, 0.0 }
 0x43e   : > { %v2613_v60 = vmax.f32 %v2597_v45, 0.0 }
 0x43f   : > { %v2611_v48 = vmax.f32 %v2595_v23, 0.0  ;;  %v3588_v44 = vpop.f32.mrb[80].mxu1 }
 0x440   : > { %v3081_v58 = vpack.c.bf16 %v2613_v60, %v2612_v30  ;;  %v2564_v31 = vadd.f32 %v3588_v44, %v5012_v35  ;;  %v2555_v50 = vpop.f32.mrb[81].mxu1 }
 0x441   : > { %v3076_v19 = vpack.c.bf16 %v2611_v48, %v2610_v20  ;;  %v2556_v28 = vadd.f32 %v5012_v35, %v2555_v50  ;;  %v3589_v33 = vpop.f32.mrb[82].mxu1 }
 0x442   : > { %3097 = vst [vmem:[%s5026_s3 + $0x28] sm:$0xff] %v3081_v58   ;;  %v2600_v24 = vadd.f32 %v2584_v26, %v2564_v31  ;;  %v2567_v1 = vadd.f32 %v3589_v33, %v5012_v35  ;;  %v2558_v37 = vpop.f32.mrb[83].mxu1 }
 0x443   : > { %3096 = vst [vmem:[%s5026_s3 + $0x20] sm:$0xff] %v3076_v19   ;;  %v2598_v40 = vadd.f32 %v2582_v29, %v2556_v28  ;;  %v2559_v0 = vadd.f32 %v5012_v35, %v2558_v37 }
 0x444   : > { %v2601_v32 = vadd.f32 %v2585_v22, %v2567_v1  ;;  %v2616_v34 = vmax.f32 %v2600_v24, 0.0 }
 0x445   : > { %v2599_v46 = vadd.f32 %v2583_v15, %v2559_v0  ;;  %v2614_v41 = vmax.f32 %v2598_v40, 0.0 }
 0x446   : > { %v2617_v14 = vmax.f32 %v2601_v32, 0.0 }
 0x447   : > { %v2615_v27 = vmax.f32 %v2599_v46, 0.0 }
 0x448   : > { %v3091_v59 = vpack.c.bf16 %v2617_v14, %v2616_v34 }
 0x449   : > { %v3086_v12 = vpack.c.bf16 %v2615_v27, %v2614_v41 }
 0x44a   : > { %3099 = vst [vmem:[%s5026_s3 + $0x38] sm:$0xff] %v3091_v59  }
 0x44b   : > { %3098 = vst [vmem:[%s5026_s3 + $0x30] sm:$0xff] %v3086_v12  }
 0x44c   : > { %4096 = shalt.err (!%p4093_p7)
}
 0x44d   : > { %s4097_s26 = scalar_lea.hbm %s5056_s18, 1024  ;;  %s4101_s20 = scalar_lea.hbm %s5213_s22, 4096 }
 0x44e   : > { %p4098_p10 = scmp.ne.s32.totalorder %s5056_s18, %s4097_s26  ;;  %p4102_p11 = scmp.lt.u32.totalorder %s5056_s18, %s5213_s22 }
 0x44f   : > { %p4103_p13 = scmp.lt.u32.totalorder %s4101_s20, %s4097_s26  ;;  %p4105_p0 = scmp.lt.u32.totalorder %s4097_s26, %s5056_s18 }
 0x450   : > { %p4099_p1 = pnand %p4098_p10, %p5214_p8 }
 0x451   : > { %p4104_p4 = por %p4103_p13, %p4102_p11 }
 0x452   : > { %p4100_p6 = pneg %p4099_p1 }
 0x453   : > { %p4106_p3 = por %p4105_p0, %p4104_p4 }
 0x455   : > { %p4107_p5 = pnand %p4106_p3, %p4100_p6 }
 0x457   : > { %4110 = shalt.err (!%p4107_p5)
}
 0x458   : > { %s4206_s4 = smov 64   ;;  %s4207_s3 = smov 4  }
 0x459   : > { %3688 = dma.vmem_to_hbm [thread:$0]  (%p5214_p8), %s5051_s1, 1024, %s5056_s18, %s2699_s10, %s4206_s4, %s4206_s4, %s4207_s3  }
 0x45a PF: > { %s5215_s16 = sld [smem:[#allocation24_spill]]  ;;  %s5216_s11 = sld [smem:[#allocation19_spill]] }
 0x45b   : > { %s5217_s25 = sld [smem:[#allocation28_spill]] }
 0x460   : > { %p3721_p9 = scmp.ge.s32.totalorder %s5215_s16, 2  ;;  %s2730_s9 = sand.u32 1, %s5216_s11  }
 0x461   : > { %p5218_p12 = scmp.ne.s32.totalorder %s5217_s25, 0  ;;  %s2731_s24 = scalar_lea.sflag [#allocation4], %s2730_s9 }
 0x463   : > { %p3711_p2 = pnand %p3721_p9, %p5218_p12 }
 0x465   : > { %4160 = dma.done.wait (!%p3711_p2), %s2731_s24, 1024  }
 0x466   : > { %4162 = vsyncadd (!%p3711_p2), %s2731_s24, 4294966272  ;;  %s30_s16 = sadd.s32 1, %s5215_s16   ;;  %s5219_s30 = sld [smem:[#allocation20_spill]] }
 0x467   : > { %p27_p7 = scmp.ge.s32.totalorder %s30_s16, 6   ;;  %s5220_s10 = sld [smem:[#allocation21_spill]] }
 0x468   : > { %s5221_s11 = sld [smem:[#allocation31_spill]]  ;;  %s5222_s19 = sld [smem:[#allocation29_spill]] }
 0x469   : > { %s5223_s8 = sld [smem:[#allocation30_spill]]  ;;  %s5224_s12 = smov %s4185_s14 }
 0x46a   : > { %s5225_s13 = smov %s4189_s15  ;;  %29 = sbr.rel (!%p27_p7) target bundleno = 18 (0x12), region = 139 }
 0x46e   : > { %s5226_s14 = smov %s5222_s19 }
 0x46f   : > { %s5227_s15 = smov %s5223_s8 }
 0x471   :  { %2736 = vsyncpa [#allocation3], 1 }
 0x472   :  { %2738 = vsyncpa [#allocation3 + $0x1], 1 }
 0x473   :  { %2739 = vsyncpa [#allocation6], 1 }
 0x474   :  { %2741 = vsyncpa [#allocation6 + $0x1], 1 }
 0x475   :  { %2742 = vsyncpa [#allocation9], 1 }
 0x476   :  { %2743 = vsyncpa [#allocation12], 1 }
 0x477   :  { %2744 = vsyncpa [#allocation4], 1 }
 0x478   :  { %2746 = vsyncpa [#allocation4 + $0x1], 1 }

</bundles_post_ra>
